<compile_context>
chip_gen: v7x
topology: tpu7x:2x2x1
jax: 0.10.0
libtpu: 0.0.40
codegen_flags: <defaults>
</compile_context>

<pallas_src>
import functools

import jax
import jax.numpy as jnp
from jax.experimental import pallas as pl
from jax.experimental.pallas import tpu as pltpu


LAYER_CFG = ((64, 3, 1), (128, 4, 2), (256, 23, 2), (512, 3, 2))
BN_EPS = 1e-5


def _round_up(x, m):
    return (x + m - 1) // m * m


def _pick_rows(m):
    """Row tile and padded row count: multiple of 8, capped at 256."""
    if m <= 256:
        tm = _round_up(m, 8)
        return tm, tm
    return 256, _round_up(m, 256)


def _pick_k(k):
    for tk in (512, 384, 256, 128):
        if k % tk == 0:
            return tk
    return k  # single full-K block (block dim == array dim is always legal)


def _pick_n(n):
    if n >= 512 and n % 256 == 0:
        return 256
    if n % 128 == 0:
        return 128
    return n  # full-N block (e.g. N == 64)


# --------------------------------------------------------------------------
# Fused conv-as-matmul kernel:
#   out = (optional relu(A*scale_k + bias_k)) @ W   (bf16 MXU, f32 accumulate)
#   stats = per-output-column [sum, sum of squares]  (fused BN statistics)
# grid = (j over N tiles [parallel], i over M tiles, k over K tiles)
# --------------------------------------------------------------------------

def _conv_mm_kernel(*refs, fuse_in, tm, m_true, masked):
    if fuse_in:
        x_ref, w_ref, s_ref, b_ref, o_ref, st_ref, acc_ref, sacc_ref = refs
    else:
        x_ref, w_ref, o_ref, st_ref, acc_ref, sacc_ref = refs

    i = pl.program_id(1)
    k = pl.program_id(2)
    ni = pl.num_programs(1)
    nk = pl.num_programs(2)

    @pl.when(k == 0)
    def _():
        acc_ref[...] = jnp.zeros_like(acc_ref)

    @pl.when(jnp.logical_and(i == 0, k == 0))
    def _():
        sacc_ref[...] = jnp.zeros_like(sacc_ref)

    a = x_ref[...]
    if fuse_in:
        # BN affine + ReLU of the producing conv, applied on load (VPU, hidden
        # under the MXU), per K-channel.
        a = jnp.maximum(a.astype(jnp.float32) * s_ref[...] + b_ref[...], 0.0)
    acc_ref[...] += jnp.dot(a.astype(jnp.bfloat16), w_ref[...],
                            preferred_element_type=jnp.float32)

    @pl.when(k == nk - 1)
    def _():
        acc = acc_ref[...]
        o_ref[...] = acc.astype(o_ref.dtype)
        if masked:
            rows = jax.lax.broadcasted_iota(jnp.int32, acc.shape, 0) + i * tm
            av = jnp.where(rows < m_true, acc, 0.0)
        else:
            av = acc
        s0 = jnp.sum(av, axis=0, keepdims=True)
        s1 = jnp.sum(av * acc, axis=0, keepdims=True)
        sacc_ref[...] += jnp.concatenate([s0, s1], axis=0)

    @pl.when(jnp.logical_and(i == ni - 1, k == nk - 1))
    def _():
        st_ref[...] = sacc_ref[...]


def conv_matmul(a, w, in_scale=None, in_bias=None, out_dtype=jnp.bfloat16):
    """a: (M, K) activations, w: (K, N) bf16 weights.

    Returns (out (M, N) out_dtype, stats (2, N) f32 = per-column [sum, sum-sq]).
    """
    M, K = a.shape
    Kw, N = w.shape
    assert K == Kw
    tm, Mp = _pick_rows(M)
    tk = _pick_k(K)
    tn = _pick_n(N)
    if Mp != M:
        a = jnp.pad(a, ((0, Mp - M), (0, 0)))

    fuse_in = in_scale is not None
    # Zero-padded rows stay zero through the matmul unless a fused bias is
    # applied; only then do the padded rows need masking out of the stats.
    masked = fuse_in and (Mp != M)

    x_spec = pl.BlockSpec((tm, tk), lambda j, i, k: (i, k))
    w_spec = pl.BlockSpec((tk, tn), lambda j, i, k: (k, j))
    o_spec = pl.BlockSpec((tm, tn), lambda j, i, k: (i, j))
    st_spec = pl.BlockSpec((2, tn), lambda j, i, k: (0, j))

    if fuse_in:
        sb_spec = pl.BlockSpec((1, tk), lambda j, i, k: (0, k))
        in_specs = [x_spec, w_spec, sb_spec, sb_spec]
        inputs = (a, w,
                  in_scale.reshape(1, K).astype(jnp.float32),
                  in_bias.reshape(1, K).astype(jnp.float32))
    else:
        in_specs = [x_spec, w_spec]
        inputs = (a, w)

    kernel = functools.partial(_conv_mm_kernel, fuse_in=fuse_in, tm=tm,
                               m_true=M, masked=masked)
    out, stats = pl.pallas_call(
        kernel,
        out_shape=(jax.ShapeDtypeStruct((Mp, N), out_dtype),
                   jax.ShapeDtypeStruct((2, N), jnp.float32)),
        grid_spec=pltpu.PrefetchScalarGridSpec(
            num_scalar_prefetch=0,
            grid=(N // tn, Mp // tm, K // tk),
            in_specs=in_specs,
            out_specs=[o_spec, st_spec],
            scratch_shapes=[pltpu.VMEM((tm, tn), jnp.float32),
                            pltpu.VMEM((2, tn), jnp.float32)],
        ),
        compiler_params=pltpu.CompilerParams(
            dimension_semantics=("parallel", "arbitrary", "arbitrary")),
    )(*inputs)
    if Mp != M:
        out = out[:M]
    return out, stats


# --------------------------------------------------------------------------
# BN helpers and fused elementwise kernels
# --------------------------------------------------------------------------

def _bn_stats_to_affine(stats, gamma, beta, count):
    """Batch-norm (training mode, biased variance) -> per-channel scale/bias."""
    mean = stats[0] / count
    var = stats[1] / count - mean * mean
    scale = gamma * jax.lax.rsqrt(var + BN_EPS)
    bias = beta - mean * scale
    return scale, bias


def _bn_res_relu_kernel(x_ref, s_ref, b_ref, r_ref, o_ref):
    y = (x_ref[...].astype(jnp.float32) * s_ref[...] + b_ref[...]
         + r_ref[...].astype(jnp.float32))
    o_ref[...] = jnp.maximum(y, 0.0).astype(o_ref.dtype)


def _bn2_res_relu_kernel(x_ref, s_ref, b_ref, r_ref, rs_ref, rb_ref, o_ref):
    y = (x_ref[...].astype(jnp.float32) * s_ref[...] + b_ref[...]
         + r_ref[...].astype(jnp.float32) * rs_ref[...] + rb_ref[...])
    o_ref[...] = jnp.maximum(y, 0.0).astype(o_ref.dtype)


def bn_residual_relu(x_raw, scale, bias, residual, res_scale=None, res_bias=None):
    """y = relu(x*scale + bias + (residual  or  residual*res_scale + res_bias))."""
    M, C = x_raw.shape
    tm, Mp = _pick_rows(M)

    def _pad_rows(t):
        return t if Mp == M else jnp.pad(t, ((0, Mp - M), (0, 0)))

    row = pl.BlockSpec((tm, C), lambda i: (i, 0))
    chan = pl.BlockSpec((1, C), lambda i: (0, 0))
    s2 = scale.reshape(1, C).astype(jnp.float32)
    b2 = bias.reshape(1, C).astype(jnp.float32)

    if res_scale is not None:
        kernel = _bn2_res_relu_kernel
        inputs = (_pad_rows(x_raw), s2, b2, _pad_rows(residual),
                  res_scale.reshape(1, C).astype(jnp.float32),
                  res_bias.reshape(1, C).astype(jnp.float32))
        in_specs = [row, chan, chan, row, chan, chan]
    else:
        kernel = _bn_res_relu_kernel
        inputs = (_pad_rows(x_raw), s2, b2, _pad_rows(residual))
        in_specs = [row, chan, chan, row]

    out = pl.pallas_call(
        kernel,
        out_shape=jax.ShapeDtypeStruct((Mp, C), jnp.float32),
        grid=(Mp // tm,),
        in_specs=in_specs,
        out_specs=row,
        compiler_params=pltpu.CompilerParams(dimension_semantics=("parallel",)),
    )(*inputs)
    return out if Mp == M else out[:M]


# --------------------------------------------------------------------------
# Stem maxpool (bn1 affine + relu folded into the window construction)
# --------------------------------------------------------------------------

def _max9_kernel(*refs):
    o_ref = refs[-1]
    m = refs[0][...]
    for r in refs[1:-1]:
        m = jnp.maximum(m, r[...])
    o_ref[...] = m


def bn_relu_maxpool_3x3_s2(conv_raw, scale, bias):
    """relu(bn-affine(conv_raw)) followed by 3x3/stride2/pad1 max-pool (NHWC)."""
    x = jnp.maximum(conv_raw.astype(jnp.float32) * scale + bias, 0.0)
    N, H, W, C = x.shape
    Ho = (H + 2 - 3) // 2 + 1
    Wo = (W + 2 - 3) // 2 + 1
    # Zero padding is equivalent to -inf padding here: pooled values are
    # post-ReLU (>= 0) and every window contains at least one valid element.
    xp = jnp.pad(x, ((0, 0), (1, 1), (1, 1), (0, 0)))
    M = N * Ho * Wo
    tm, Mp = _pick_rows(M)
    wins = []
    for dh in range(3):
        for dw in range(3):
            wnd = xp[:, dh:dh + 2 * (Ho - 1) + 1:2,
                     dw:dw + 2 * (Wo - 1) + 1:2, :].reshape(M, C)
            if Mp != M:
                wnd = jnp.pad(wnd, ((0, Mp - M), (0, 0)))
            wins.append(wnd)
    row = pl.BlockSpec((tm, C), lambda i: (i, 0))
    out = pl.pallas_call(
        _max9_kernel,
        out_shape=jax.ShapeDtypeStruct((Mp, C), jnp.float32),
        grid=(Mp // tm,),
        in_specs=[row] * 9,
        out_specs=row,
        compiler_params=pltpu.CompilerParams(dimension_semantics=("parallel",)),
    )(*wins)
    return out[:M].reshape(N, Ho, Wo, C)


# --------------------------------------------------------------------------
# Conv glue (im2col for spatial kernels; 1x1 convs feed the matmul directly)
# --------------------------------------------------------------------------

def _im2col(x, kh, kw, stride, padding):
    """NHWC -> ((N*Ho*Wo, kh*kw*C) bf16 patches, (N, Ho, Wo))."""
    N, H, W, C = x.shape
    if padding:
        x = jnp.pad(x, ((0, 0), (padding, padding), (padding, padding), (0, 0)))
    Hp, Wp = H + 2 * padding, W + 2 * padding
    Ho = (Hp - kh) // stride + 1
    Wo = (Wp - kw) // stride + 1
    cols = []
    for dh in range(kh):
        for dw in range(kw):
            cols.append(x[:, dh:dh + stride * (Ho - 1) + 1:stride,
                          dw:dw + stride * (Wo - 1) + 1:stride, :])
    pat = jnp.concatenate(cols, axis=-1).astype(jnp.bfloat16)
    return pat.reshape(N * Ho * Wo, kh * kw * C), (N, Ho, Wo)


# --------------------------------------------------------------------------
# Network blocks
# --------------------------------------------------------------------------

def stem_forward(x, conv1_w, bn1_g, bn1_b):
    pat, (N, Ho, Wo) = _im2col(x, 7, 7, stride=2, padding=3)
    raw, stats = conv_matmul(pat, conv1_w)
    scale, bias = _bn_stats_to_affine(stats, bn1_g, bn1_b, N * Ho * Wo)
    raw = raw.reshape(N, Ho, Wo, conv1_w.shape[1])
    return bn_relu_maxpool_3x3_s2(raw, scale, bias)


def bottleneck_forward(x, p, stride):
    N, H, W, cin = x.shape
    planes = p["w1"].shape[1]
    cout = p["w3"].shape[1]
    M1 = N * H * W

    # conv1 (1x1) -> bn1 statistics fused into the matmul epilogue.
    r1, st1 = conv_matmul(x.reshape(M1, cin), p["w1"])
    s1, b1 = _bn_stats_to_affine(st1, p["g1"], p["b1"], M1)

    # conv2 (3x3, stride): bn1 affine + relu applied in the im2col glue (fused
    # by XLA into the patch gather), so spatial zero-padding stays correct.
    act1 = jnp.maximum(r1.astype(jnp.float32) * s1 + b1, 0.0)
    act1 = act1.astype(jnp.bfloat16).reshape(N, H, W, planes)
    pat, (_, Ho, Wo) = _im2col(act1, 3, 3, stride=stride, padding=1)
    M2 = N * Ho * Wo
    r2, st2 = conv_matmul(pat, p["w2"])
    s2, b2 = _bn_stats_to_affine(st2, p["g2"], p["b2"], M2)

    # conv3 (1x1): bn2 affine + relu fused into the matmul prologue.
    r3, st3 = conv_matmul(r2, p["w3"], in_scale=s2, in_bias=b2)
    s3, b3 = _bn_stats_to_affine(st3, p["g3"], p["b3"], M2)

    if "wd" in p:  # projection shortcut: conv1x1(stride) + bn
        xs = x[:, ::stride, ::stride, :] if stride > 1 else x
        rd, std = conv_matmul(xs.reshape(M2, cin), p["wd"])
        sd, bd = _bn_stats_to_affine(std, p["gd"], p["bd"], M2)
        y = bn_residual_relu(r3, s3, b3, rd, res_scale=sd, res_bias=bd)
    else:
        y = bn_residual_relu(r3, s3, b3, x.reshape(M2, cout))
    return y.reshape(N, Ho, Wo, cout)


_stem_jit = jax.jit(stem_forward)
_block_jit = jax.jit(bottleneck_forward, static_argnames=("stride",))


def encoding_rawres101_forward(x_nchw, params):
    x = jnp.transpose(x_nchw, (0, 2, 3, 1)).astype(jnp.float32)  # NCHW -> NHWC
    x = _stem_jit(x, params["conv1_w"], params["bn1_g"], params["bn1_b"])
    feats = []
    for li, (_, blocks, stride) in enumerate(LAYER_CFG):
        for b in range(blocks):
            s = stride if b == 0 else 1
            x = _block_jit(x, params["layers"][li][b], stride=s)
        feats.append(jnp.transpose(x, (0, 3, 1, 2)))  # back to NCHW
    return feats  # [x1, x2, x3, x4]


# --------------------------------------------------------------------------
# Parameter construction (deterministic He-normal; weights pre-reshaped to
# (K, N) and pre-cast to bf16 once, outside the per-forward path)
# --------------------------------------------------------------------------

class _KeyGen:
    def __init__(self, seed):
        self._key = jax.random.PRNGKey(seed)

    def __call__(self):
        self._key, sub = jax.random.split(self._key)
        return sub


def _init_conv(key, kh, kw, cin, cout):
    fan_in = kh * kw * cin
    std = (2.0 / fan_in) ** 0.5
    w = jax.random.normal(key, (kh, kw, cin, cout), jnp.float32) * std
    return w.reshape(kh * kw * cin, cout).astype(jnp.bfloat16)


def make_resnet101_params(seed=0):
    kg = _KeyGen(seed)
    ones = lambda c: jnp.ones((c,), jnp.float32)
    zeros = lambda c: jnp.zeros((c,), jnp.float32)
    params = {"conv1_w": _init_conv(kg(), 7, 7, 3, 64),
              "bn1_g": ones(64), "bn1_b": zeros(64),
              "layers": []}
    inplanes = 64
    for planes, blocks, stride in LAYER_CFG:
        layer = []
        for b in range(blocks):
            s = stride if b == 0 else 1
            p = {"w1": _init_conv(kg(), 1, 1, inplanes, planes),
                 "g1": ones(planes), "b1": zeros(planes),
                 "w2": _init_conv(kg(), 3, 3, planes, planes),
                 "g2": ones(planes), "b2": zeros(planes),
                 "w3": _init_conv(kg(), 1, 1, planes, 4 * planes),
                 "g3": ones(4 * planes), "b3": zeros(4 * planes)}
            if b == 0 and (s != 1 or inplanes != 4 * planes):
                p["wd"] = _init_conv(kg(), 1, 1, inplanes, 4 * planes)
                p["gd"] = ones(4 * planes)
                p["bd"] = zeros(4 * planes)
            layer.append(p)
            inplanes = 4 * planes
        params["layers"].append(layer)
    return params


if __name__ == "__main__":
    key = jax.random.PRNGKey(0)
    x = jax.random.normal(key, (2, 3, 64, 64), jnp.float32)  # NCHW input

    params = make_resnet101_params(seed=0)
    x1, x2, x3, x4 = encoding_rawres101_forward(x, params)
    jax.block_until_ready((x1, x2, x3, x4))

    assert x1.shape == (2, 256, 16, 16)
    assert x2.shape == (2, 512, 8, 8)
    assert x3.shape == (2, 1024, 4, 4)
    assert x4.shape == (2, 2048, 2, 2)
    print("KERNEL_OK")
</pallas_src>

<mosaic_0001>
module attributes {stable_mosaic.version = 11 : i64} {
  func.func @_conv_mm_kernel(%arg0: i32, %arg1: i32, %arg2: i32, %arg3: memref<256x147xbf16, #tpu.memory_space<vmem>>, %arg4: memref<147x64xbf16, #tpu.memory_space<vmem>>, %arg5: memref<256x64xbf16, #tpu.memory_space<vmem>>, %arg6: memref<2x64xf32, #tpu.memory_space<vmem>>, %arg7: memref<256x64xf32, #tpu.memory_space<vmem>>, %arg8: memref<2x64xf32, #tpu.memory_space<vmem>>) attributes {dimension_semantics = [#tpu.dimension_semantics<parallel>, #tpu.dimension_semantics<arbitrary>, #tpu.dimension_semantics<arbitrary>], iteration_bounds = array<i64: 1, 8, 1>, scalar_prefetch = 0 : i64, scratch_operands = 2 : i64, tpu.core_type = #tpu.core_type<tc>, window_params = [{transform_indices = @transform_0, window_bounds = array<i64: 256, 147>}, {transform_indices = @transform_1, window_bounds = array<i64: 147, 64>}, {transform_indices = @transform_2, window_bounds = array<i64: 256, 64>}, {transform_indices = @transform_3, window_bounds = array<i64: 2, 64>}]} {
    %c0_i32 = arith.constant 0 : i32
    %0 = arith.cmpi eq, %arg2, %c0_i32 : i32
    %1 = arith.extui %0 : i1 to i32
    %c0_i32_0 = arith.constant 0 : i32
    %2 = arith.cmpi ne, %1, %c0_i32_0 : i32
    scf.if %2 {
      %cst_15 = arith.constant 0.000000e+00 : f32
      %22 = vector.broadcast %cst_15 : f32 to vector<256x64xf32>
      %c0_16 = arith.constant 0 : index
      %c0_17 = arith.constant 0 : index
      %23 = vector.load %arg7[%c0_16, %c0_17] : memref<256x64xf32, #tpu.memory_space<vmem>>, vector<256x64xf32>
      tpu.vector_store %arg7[%c0_16, %c0_17], %22 {strides = array<i32>} : memref<256x64xf32, #tpu.memory_space<vmem>>, vector<256x64xf32>,
    } else {
    }
    %c0_i32_1 = arith.constant 0 : i32
    %3 = arith.cmpi eq, %arg1, %c0_i32_1 : i32
    %c0_i32_2 = arith.constant 0 : i32
    %4 = arith.cmpi eq, %arg2, %c0_i32_2 : i32
    %5 = arith.andi %3, %4 : i1
    %6 = arith.extui %5 : i1 to i32
    %c0_i32_3 = arith.constant 0 : i32
    %7 = arith.cmpi ne, %6, %c0_i32_3 : i32
    scf.if %7 {
      %cst_15 = arith.constant 0.000000e+00 : f32
      %22 = vector.broadcast %cst_15 : f32 to vector<2x64xf32>
      %c0_16 = arith.constant 0 : index
      %c0_17 = arith.constant 0 : index
      %23 = vector.load %arg8[%c0_16, %c0_17] : memref<2x64xf32, #tpu.memory_space<vmem>>, vector<2x64xf32>
      tpu.vector_store %arg8[%c0_16, %c0_17], %22 {strides = array<i32>} : memref<2x64xf32, #tpu.memory_space<vmem>>, vector<2x64xf32>,
    } else {
    }
    %c0 = arith.constant 0 : index
    %c0_4 = arith.constant 0 : index
    %8 = vector.load %arg3[%c0, %c0_4] : memref<256x147xbf16, #tpu.memory_space<vmem>>, vector<256x147xbf16>
    %c0_5 = arith.constant 0 : index
    %c0_6 = arith.constant 0 : index
    %9 = vector.load %arg7[%c0_5, %c0_6] : memref<256x64xf32, #tpu.memory_space<vmem>>, vector<256x64xf32>
    %c0_7 = arith.constant 0 : index
    %c0_8 = arith.constant 0 : index
    %10 = vector.load %arg4[%c0_7, %c0_8] : memref<147x64xbf16, #tpu.memory_space<vmem>>, vector<147x64xbf16>
    %cst = arith.constant dense<0.000000e+00> : vector<256x64xf32>
    %11 = tpu.matmul %8, %10, %cst {dimension_numbers = #tpu.dot_dimension_numbers<[1], [0], [0], [1], [0, 0, 1, 1], [], []>} : vector<256x147xbf16>, vector<147x64xbf16>, vector<256x64xf32> -> vector<256x64xf32>
    %12 = arith.addf %9, %11 : vector<256x64xf32>
    %c0_9 = arith.constant 0 : index
    %c0_10 = arith.constant 0 : index
    %13 = vector.load %arg7[%c0_9, %c0_10] : memref<256x64xf32, #tpu.memory_space<vmem>>, vector<256x64xf32>
    tpu.vector_store %arg7[%c0_9, %c0_10], %12 {strides = array<i32>} : memref<256x64xf32, #tpu.memory_space<vmem>>, vector<256x64xf32>,
    %c0_i32_11 = arith.constant 0 : i32
    %14 = arith.cmpi eq, %arg2, %c0_i32_11 : i32
    %15 = arith.extui %14 : i1 to i32
    %c0_i32_12 = arith.constant 0 : i32
    %16 = arith.cmpi ne, %15, %c0_i32_12 : i32
    scf.if %16 {
      %c0_15 = arith.constant 0 : index
      %c0_16 = arith.constant 0 : index
      %22 = vector.load %arg7[%c0_15, %c0_16] : memref<256x64xf32, #tpu.memory_space<vmem>>, vector<256x64xf32>
      %23 = arith.truncf %22 : vector<256x64xf32> to vector<256x64xbf16>
      %c0_17 = arith.constant 0 : index
      %c0_18 = arith.constant 0 : index
      %24 = vector.load %arg5[%c0_17, %c0_18] : memref<256x64xbf16, #tpu.memory_space<vmem>>, vector<256x64xbf16>
      tpu.vector_store %arg5[%c0_17, %c0_18], %23 {strides = array<i32>} : memref<256x64xbf16, #tpu.memory_space<vmem>>, vector<256x64xbf16>,
      %cst_19 = arith.constant dense<0.000000e+00> : vector<64xf32>
      %25 = vector.multi_reduction <add>, %22, %cst_19 [0] : vector<256x64xf32> to vector<64xf32>
      %26 = vector.shape_cast %25 : vector<64xf32> to vector<1x64xf32>
      %27 = arith.mulf %22, %22 : vector<256x64xf32>
      %cst_20 = arith.constant dense<0.000000e+00> : vector<64xf32>
      %28 = vector.multi_reduction <add>, %27, %cst_20 [0] : vector<256x64xf32> to vector<64xf32>
      %29 = vector.shape_cast %28 : vector<64xf32> to vector<1x64xf32>
      %c0_21 = arith.constant 0 : index
      %c0_22 = arith.constant 0 : index
      %30 = vector.load %arg8[%c0_21, %c0_22] : memref<2x64xf32, #tpu.memory_space<vmem>>, vector<2x64xf32>
      %31 = tpu.concatenate %26, %29 in 0 : vector<1x64xf32>, vector<1x64xf32> -> vector<2x64xf32>
      %32 = arith.addf %30, %31 : vector<2x64xf32>
      %c0_23 = arith.constant 0 : index
      %c0_24 = arith.constant 0 : index
      %33 = vector.load %arg8[%c0_23, %c0_24] : memref<2x64xf32, #tpu.memory_space<vmem>>, vector<2x64xf32>
      tpu.vector_store %arg8[%c0_23, %c0_24], %32 {strides = array<i32>} : memref<2x64xf32, #tpu.memory_space<vmem>>, vector<2x64xf32>,
    } else {
    }
    %c7_i32 = arith.constant 7 : i32
    %17 = arith.cmpi eq, %arg1, %c7_i32 : i32
    %c0_i32_13 = arith.constant 0 : i32
    %18 = arith.cmpi eq, %arg2, %c0_i32_13 : i32
    %19 = arith.andi %17, %18 : i1
    %20 = arith.extui %19 : i1 to i32
    %c0_i32_14 = arith.constant 0 : i32
    %21 = arith.cmpi ne, %20, %c0_i32_14 : i32
    scf.if %21 {
      %c0_15 = arith.constant 0 : index
      %c0_16 = arith.constant 0 : index
      %22 = vector.load %arg8[%c0_15, %c0_16] : memref<2x64xf32, #tpu.memory_space<vmem>>, vector<2x64xf32>
      %c0_17 = arith.constant 0 : index
      %c0_18 = arith.constant 0 : index
      %23 = vector.load %arg6[%c0_17, %c0_18] : memref<2x64xf32, #tpu.memory_space<vmem>>, vector<2x64xf32>
      tpu.vector_store %arg6[%c0_17, %c0_18], %22 {strides = array<i32>} : memref<2x64xf32, #tpu.memory_space<vmem>>, vector<2x64xf32>,
    } else {
    }
    return
  }
  func.func @transform_0(%arg0: i32, %arg1: i32, %arg2: i32) -> (i32, i32) {
    %c0_i32 = arith.constant 0 : i32
    return %arg1, %arg2 : i32, i32
  }
  func.func @transform_1(%arg0: i32, %arg1: i32, %arg2: i32) -> (i32, i32) {
    %c0_i32 = arith.constant 0 : i32
    return %arg2, %arg0 : i32, i32
  }
  func.func @transform_2(%arg0: i32, %arg1: i32, %arg2: i32) -> (i32, i32) {
    %c0_i32 = arith.constant 0 : i32
    return %arg1, %arg0 : i32, i32
  }
  func.func @transform_3(%arg0: i32, %arg1: i32, %arg2: i32) -> (i32, i32) {
    %c0_i32 = arith.constant 0 : i32
    %c0_i32_0 = arith.constant 0 : i32
    return %c0_i32, %arg0 : i32, i32
  }
}

module attributes {stable_mosaic.version = 11 : i64} {
  func.func @_max9_kernel(%arg0: i32, %arg1: memref<256x64xf32, #tpu.memory_space<vmem>>, %arg2: memref<256x64xf32, #tpu.memory_space<vmem>>, %arg3: memref<256x64xf32, #tpu.memory_space<vmem>>, %arg4: memref<256x64xf32, #tpu.memory_space<vmem>>, %arg5: memref<256x64xf32, #tpu.memory_space<vmem>>, %arg6: memref<256x64xf32, #tpu.memory_space<vmem>>, %arg7: memref<256x64xf32, #tpu.memory_space<vmem>>, %arg8: memref<256x64xf32, #tpu.memory_space<vmem>>, %arg9: memref<256x64xf32, #tpu.memory_space<vmem>>, %arg10: memref<256x64xf32, #tpu.memory_space<vmem>>) attributes {dimension_semantics = [#tpu.dimension_semantics<parallel>], iteration_bounds = array<i64: 2>, scalar_prefetch = 0 : i64, scratch_operands = 0 : i64, tpu.core_type = #tpu.core_type<tc>, window_params = [{transform_indices = @transform_0, window_bounds = array<i64: 256, 64>}, {transform_indices = @transform_1, window_bounds = array<i64: 256, 64>}, {transform_indices = @transform_2, window_bounds = array<i64: 256, 64>}, {transform_indices = @transform_3, window_bounds = array<i64: 256, 64>}, {transform_indices = @transform_4, window_bounds = array<i64: 256, 64>}, {transform_indices = @transform_5, window_bounds = array<i64: 256, 64>}, {transform_indices = @transform_6, window_bounds = array<i64: 256, 64>}, {transform_indices = @transform_7, window_bounds = array<i64: 256, 64>}, {transform_indices = @transform_8, window_bounds = array<i64: 256, 64>}, {transform_indices = @transform_9, window_bounds = array<i64: 256, 64>}]} {
    %c0 = arith.constant 0 : index
    %c0_0 = arith.constant 0 : index
    %0 = vector.load %arg1[%c0, %c0_0] : memref<256x64xf32, #tpu.memory_space<vmem>>, vector<256x64xf32>
    %c0_1 = arith.constant 0 : index
    %c0_2 = arith.constant 0 : index
    %1 = vector.load %arg2[%c0_1, %c0_2] : memref<256x64xf32, #tpu.memory_space<vmem>>, vector<256x64xf32>
    %2 = arith.maximumf %0, %1 : vector<256x64xf32>
    %c0_3 = arith.constant 0 : index
    %c0_4 = arith.constant 0 : index
    %3 = vector.load %arg3[%c0_3, %c0_4] : memref<256x64xf32, #tpu.memory_space<vmem>>, vector<256x64xf32>
    %4 = arith.maximumf %2, %3 : vector<256x64xf32>
    %c0_5 = arith.constant 0 : index
    %c0_6 = arith.constant 0 : index
    %5 = vector.load %arg4[%c0_5, %c0_6] : memref<256x64xf32, #tpu.memory_space<vmem>>, vector<256x64xf32>
    %6 = arith.maximumf %4, %5 : vector<256x64xf32>
    %c0_7 = arith.constant 0 : index
    %c0_8 = arith.constant 0 : index
    %7 = vector.load %arg5[%c0_7, %c0_8] : memref<256x64xf32, #tpu.memory_space<vmem>>, vector<256x64xf32>
    %8 = arith.maximumf %6, %7 : vector<256x64xf32>
    %c0_9 = arith.constant 0 : index
    %c0_10 = arith.constant 0 : index
    %9 = vector.load %arg6[%c0_9, %c0_10] : memref<256x64xf32, #tpu.memory_space<vmem>>, vector<256x64xf32>
    %10 = arith.maximumf %8, %9 : vector<256x64xf32>
    %c0_11 = arith.constant 0 : index
    %c0_12 = arith.constant 0 : index
    %11 = vector.load %arg7[%c0_11, %c0_12] : memref<256x64xf32, #tpu.memory_space<vmem>>, vector<256x64xf32>
    %12 = arith.maximumf %10, %11 : vector<256x64xf32>
    %c0_13 = arith.constant 0 : index
    %c0_14 = arith.constant 0 : index
    %13 = vector.load %arg8[%c0_13, %c0_14] : memref<256x64xf32, #tpu.memory_space<vmem>>, vector<256x64xf32>
    %14 = arith.maximumf %12, %13 : vector<256x64xf32>
    %c0_15 = arith.constant 0 : index
    %c0_16 = arith.constant 0 : index
    %15 = vector.load %arg9[%c0_15, %c0_16] : memref<256x64xf32, #tpu.memory_space<vmem>>, vector<256x64xf32>
    %16 = arith.maximumf %14, %15 : vector<256x64xf32>
    %c0_17 = arith.constant 0 : index
    %c0_18 = arith.constant 0 : index
    %17 = vector.load %arg10[%c0_17, %c0_18] : memref<256x64xf32, #tpu.memory_space<vmem>>, vector<256x64xf32>
    tpu.vector_store %arg10[%c0_17, %c0_18], %16 {strides = array<i32>} : memref<256x64xf32, #tpu.memory_space<vmem>>, vector<256x64xf32>,
    return
  }
  func.func @transform_0(%arg0: i32) -> (i32, i32) {
    %c0_i32 = arith.constant 0 : i32
    %c0_i32_0 = arith.constant 0 : i32
    return %arg0, %c0_i32 : i32, i32
  }
  func.func @transform_1(%arg0: i32) -> (i32, i32) {
    %c0_i32 = arith.constant 0 : i32
    %c0_i32_0 = arith.constant 0 : i32
    return %arg0, %c0_i32 : i32, i32
  }
  func.func @transform_2(%arg0: i32) -> (i32, i32) {
    %c0_i32 = arith.constant 0 : i32
    %c0_i32_0 = arith.constant 0 : i32
    return %arg0, %c0_i32 : i32, i32
  }
  func.func @transform_3(%arg0: i32) -> (i32, i32) {
    %c0_i32 = arith.constant 0 : i32
    %c0_i32_0 = arith.constant 0 : i32
    return %arg0, %c0_i32 : i32, i32
  }
  func.func @transform_4(%arg0: i32) -> (i32, i32) {
    %c0_i32 = arith.constant 0 : i32
    %c0_i32_0 = arith.constant 0 : i32
    return %arg0, %c0_i32 : i32, i32
  }
  func.func @transform_5(%arg0: i32) -> (i32, i32) {
    %c0_i32 = arith.constant 0 : i32
    %c0_i32_0 = arith.constant 0 : i32
    return %arg0, %c0_i32 : i32, i32
  }
  func.func @transform_6(%arg0: i32) -> (i32, i32) {
    %c0_i32 = arith.constant 0 : i32
    %c0_i32_0 = arith.constant 0 : i32
    return %arg0, %c0_i32 : i32, i32
  }
  func.func @transform_7(%arg0: i32) -> (i32, i32) {
    %c0_i32 = arith.constant 0 : i32
    %c0_i32_0 = arith.constant 0 : i32
    return %arg0, %c0_i32 : i32, i32
  }
  func.func @transform_8(%arg0: i32) -> (i32, i32) {
    %c0_i32 = arith.constant 0 : i32
    %c0_i32_0 = arith.constant 0 : i32
    return %arg0, %c0_i32 : i32, i32
  }
  func.func @transform_9(%arg0: i32) -> (i32, i32) {
    %c0_i32 = arith.constant 0 : i32
    %c0_i32_0 = arith.constant 0 : i32
    return %arg0, %c0_i32 : i32, i32
  }
}

</mosaic_0001>

<bundles_post_ra>
// kernel: stem_forward.2
= control target key start
LH: loop header
LB: loop body
LE: loop exit
PB: predicated region body
PF: predicated region fallthrough
CT: control target
= control target key end

     0   :  { %s1679_s12 = smov 0   ;;  %s1681_s13 = smov 0   ;;  %s2129_s0 = inlined_call_operand.vmem [shape: bf16[2048,147], index: 0, kind: input, shape index: {}]   ;;  %s2130_s1 = inlined_call_operand.vmem [shape: bf16[147,64], index: 1, kind: input, shape index: {}]   ;;  %s2131_s2 = inlined_call_operand.vmem [shape: bf16[2048,64], index: 2, kind: output, shape index: {0}]   ;;  %s2132_s3 = inlined_call_operand.vmem [shape: f32[2,64], index: 3, kind: output, shape index: {1}]  }
   0x1   :  { %s1683_s14 = smov 0  }
   0x2 LB: > { %s29_s15 = sadd.s32 1, %s1649_s13  ;;  %p1389_p0 = scmp.ge.s32.totalorder %s1653_s14, 1  ;;  %s1653_s14 = sphi %s1683_s14, %s14_s14   ;;  %s1649_s13 = sphi %s1681_s13, %s2135_s13   ;;  %s1645_s12 = sphi %s1679_s12, %s2134_s12  }
   0x3   : > { %p31_p1 = scmp.ge.s32.totalorder %s29_s15, 8  ;;  %p186_p2 = scmp.lt.s32.totalorder %s1653_s14, 9 }
   0x5   : > { %s2137_s15 = smov (%p31_p1, %s29_s15), 0  ;;  %p187_p3 = pnand %p1389_p0, %p186_p2 }
   0x6   : > { %s1390_s16 = sshll.u32 (!%p187_p3), %s1645_s12, 5  ;;  %vm269_vm0 = vcmask (!%p187_p3), 523264   ;;  %p302_p4 = scmp.eq.s32.totalorder (!%p187_p3), %s1645_s12, 0  ;;  %v1655_v0 = vmov (!%p187_p3), 0.0  }
   0x7   : > { %190 = sbr.rel (%p187_p3) target bundleno = 407 (0x197), region = 28  ;;  %p1703_p5 = scmp.lt.s32.totalorder (!%p187_p3), %s1390_s16, 255  ;;  %270 = vst.msk [vmem:[#allocation2] sm:$0xff] (!%p187_p3), %vm269_vm0, %v1655_v0  ;;  %271 = vst.msk [vmem:[#allocation2 + $0x8] sm:$0xff] (!%p187_p3), %vm269_vm0, %v1655_v0 }
   0x8   : > { %272 = vst.msk [vmem:[#allocation2 + $0x10] sm:$0xff] (!%p187_p3), %vm269_vm0, %v1655_v0  ;;  %273 = vst.msk [vmem:[#allocation2 + $0x18] sm:$0xff] (!%p187_p3), %vm269_vm0, %v1655_v0 }
   0x9   : > { %274 = vst.msk [vmem:[#allocation2 + $0x20] sm:$0xff] (!%p187_p3), %vm269_vm0, %v1655_v0  ;;  %275 = vst.msk [vmem:[#allocation2 + $0x28] sm:$0xff] (!%p187_p3), %vm269_vm0, %v1655_v0 }
   0xa   : > { %276 = vst.msk [vmem:[#allocation2 + $0x30] sm:$0xff] (!%p187_p3), %vm269_vm0, %v1655_v0  ;;  %277 = vst.msk [vmem:[#allocation2 + $0x38] sm:$0xff] (!%p187_p3), %vm269_vm0, %v1655_v0 }
   0xb   : > { %278 = vst.msk [vmem:[#allocation2 + $0x40] sm:$0xff] (!%p187_p3), %vm269_vm0, %v1655_v0  ;;  %279 = vst.msk [vmem:[#allocation2 + $0x48] sm:$0xff] (!%p187_p3), %vm269_vm0, %v1655_v0 }
   0xc   : > { %280 = vst.msk [vmem:[#allocation2 + $0x50] sm:$0xff] (!%p187_p3), %vm269_vm0, %v1655_v0  ;;  %281 = vst.msk [vmem:[#allocation2 + $0x58] sm:$0xff] (!%p187_p3), %vm269_vm0, %v1655_v0 }
   0xd   : > { %282 = vst.msk [vmem:[#allocation2 + $0x60] sm:$0xff] (!%p187_p3), %vm269_vm0, %v1655_v0  ;;  %283 = vst.msk [vmem:[#allocation2 + $0x68] sm:$0xff] (!%p187_p3), %vm269_vm0, %v1655_v0 }
   0xe   : > { %284 = vst.msk [vmem:[#allocation2 + $0x70] sm:$0xff] %vm269_vm0, %v1655_v0  ;;  %285 = vst.msk [vmem:[#allocation2 + $0x78] sm:$0xff] %vm269_vm0, %v1655_v0  ;;  %s2139_s16 = smov (!%p1703_p5, %s1390_s16), 255  ;;  %vm307_vm1 = vcmask (%p302_p4), 517120   ;;  %v1656_v1 = vmov (%p302_p4), 0.0  }
   0xf   : > { %286 = vst.msk [vmem:[#allocation2 + $0x80] sm:$0xff] %vm269_vm0, %v1655_v0  ;;  %287 = vst.msk [vmem:[#allocation2 + $0x88] sm:$0xff] %vm269_vm0, %v1655_v0  ;;  %s1490_s18 = sshll.u32 %s2139_s16, 3  ;;  %s1394_s19 = sshll.u32 %s2139_s16, 2 }
  0x10   : > { %288 = vst.msk [vmem:[#allocation2 + $0x90] sm:$0xff] %vm269_vm0, %v1655_v0  ;;  %289 = vst.msk [vmem:[#allocation2 + $0x98] sm:$0xff] %vm269_vm0, %v1655_v0  ;;  %s1746_s22 = scalar_lea.vmem %s2129_s0, %s1490_s18  ;;  %s1751_s25 = scalar_lea.vmem %s2131_s2, %s1394_s19 }
  0x11   : > { %290 = vst.msk [vmem:[#allocation2 + $0xa0] sm:$0xff] %vm269_vm0, %v1655_v0  ;;  %291 = vst.msk [vmem:[#allocation2 + $0xa8] sm:$0xff] %vm269_vm0, %v1655_v0  ;;  %306 = sbr.rel (!%p302_p4) target bundleno = 24 (0x18), region = 36 }
  0x12   : > { %292 = vst.msk [vmem:[#allocation2 + $0xb0] sm:$0xff] %vm269_vm0, %v1655_v0  ;;  %293 = vst.msk [vmem:[#allocation2 + $0xb8] sm:$0xff] %vm269_vm0, %v1655_v0 }
  0x13   : > { %294 = vst.msk [vmem:[#allocation2 + $0xc0] sm:$0xff] %vm269_vm0, %v1655_v0  ;;  %295 = vst.msk [vmem:[#allocation2 + $0xc8] sm:$0xff] %vm269_vm0, %v1655_v0 }
  0x14   : > { %296 = vst.msk [vmem:[#allocation2 + $0xd0] sm:$0xff] %vm269_vm0, %v1655_v0  ;;  %297 = vst.msk [vmem:[#allocation2 + $0xd8] sm:$0xff] %vm269_vm0, %v1655_v0 }
  0x15   : > { %298 = vst.msk [vmem:[#allocation2 + $0xe0] sm:$0xff] %vm269_vm0, %v1655_v0  ;;  %299 = vst.msk [vmem:[#allocation2 + $0xe8] sm:$0xff] %vm269_vm0, %v1655_v0 }
  0x16   : > { %300 = vst.msk [vmem:[#allocation2 + $0xf0] sm:$0xff] %vm269_vm0, %v1655_v0  ;;  %301 = vst.msk [vmem:[#allocation2 + $0xf8] sm:$0xff] %vm269_vm0, %v1655_v0 }
  0x17   : > { %308 = vst.msk [vmem:[#allocation3] sm:$0x3] (%p302_p4), %vm307_vm1, %v1656_v1 }
  0x18 PF: > { %v1573_v2 = vld [vmem:[%s2130_s1] sm:$0xff]   ;;  %v1657_v3 = vmov 0   ;;  %v1574_v4 = vld [vmem:[%s2130_s1 + $0x8] sm:$0xff]   ;;  %v1575_v5 = vld [vmem:[%s2130_s1 + $0x10] sm:$0xff]   ;;  %vm593_vm2 = vcmask 154624   ;;  %vm642_vm3 = vcmask 1040384  }
  0x19   : > { %649 = vmatprep.subr.bf16.mxu0 %v1657_v3  ;;  %1525 = vmatprep.subr.bf16.mxu1 %v1657_v3  ;;  %v1576_v6 = vld [vmem:[%s2130_s1 + $0x18] sm:$0xff]   ;;  %v1585_v7 = vld [vmem:[%s1746_s22 + $0x4] ss:$8 sps:$4 sm:$0xff]   ;;  %v1579_v11 = vld [vmem:[%s2130_s1 + $0x30] sm:$0xff]   ;;  %vm643_vm4 = vcmask 1041408   ;;  %v1658_v13 = vmov 65535  }
  0x1a   : > { %650 = vmatpush1.bf16.msra.mxu0 %v1573_v2  ;;  %1535 = vmatpush1.bf16.msra.mxu1 %v1573_v2  ;;  %v1577_v8 = vld [vmem:[%s2130_s1 + $0x20] sm:$0xff]   ;;  %v1578_v10 = vld [vmem:[%s2130_s1 + $0x28] sm:$0xff]   ;;  %v1580_v12 = vld [vmem:[%s2130_s1 + $0x38] sm:$0xff]   ;;  %v644_v14 = vsel %vm642_vm3, 4294967295, %v1658_v13  ;;  %p1246_p6 = scmp.eq.s32.totalorder %s1645_s12, 7  ;;  %vm1038_vm5 = vcmask 519168  }
  0x1b   : > { %651 = vmatprep.subr.bf16.mxu0 %v1657_v3  ;;  %1526 = vmatprep.subr.bf16.mxu1 %v1657_v3  ;;  %v1597_v9 = vld [vmem:[%s1746_s22 + $0x84] ss:$8 sps:$4 sm:$0xff]   ;;  %v1582_v16 = vld [vmem:[%s2130_s1 + $0x48] ss:$0 sps:$4 sm:$0x33]   ;;  %v645_v17 = vsel %vm643_vm4, %v644_v14, 0 }
  0x1c   : > { %1438 = vmatprep.mubr.msk.bf16.mxu0 %vm593_vm2, %v1585_v7  ;;  %1446 = vmatprep.mubr.msk.bf16.mxu1 %vm593_vm2, %v1597_v9  ;;  %v1581_v15 = vld [vmem:[%s2130_s1 + $0x40] sm:$0xff]   ;;  %v647_v18 = vand.u32 %v1582_v16, %v645_v17  ;;  %v1586_v21 = vld [vmem:[%s1746_s22 + $0x14] ss:$8 sps:$4 sm:$0xff]   ;;  %v1588_v23 = vld [vmem:[%s1746_s22 + $0x10] ss:$8 sps:$4 sm:$0xff]   ;;  %vm1244_vm6 = vcmask 517120  }
  0x1d   : > { %v1583_v19 = vld [vmem:[%s1746_s22] ss:$8 sps:$4 sm:$0xff]   ;;  %v1601_v22 = vld [vmem:[%s1746_s22 + $0x94] ss:$8 sps:$4 sm:$0xff]   ;;  %v1603_v24 = vld [vmem:[%s1746_s22 + $0x90] ss:$8 sps:$4 sm:$0xff]  }
  0x1e   : > { %652 = vmatpush1.bf16.msra.mxu0 %v1574_v4  ;;  %1536 = vmatpush1.bf16.msra.mxu1 %v1574_v4  ;;  %v1595_v20 = vld [vmem:[%s1746_s22 + $0x80] ss:$8 sps:$4 sm:$0xff]   ;;  %v1589_v25 = vld [vmem:[%s1746_s22 + $0x24] ss:$8 sps:$4 sm:$0xff]   ;;  %v1592_v29 = vld [vmem:[%s1746_s22 + $0x34] ss:$8 sps:$4 sm:$0xff]  }
  0x1f   : > { %653 = vmatprep.subr.bf16.mxu0 %v1657_v3  ;;  %1527 = vmatprep.subr.bf16.mxu1 %v1657_v3  ;;  %v1607_v26 = vld [vmem:[%s1746_s22 + $0xa4] ss:$8 sps:$4 sm:$0xff]   ;;  %v1591_v27 = vld [vmem:[%s1746_s22 + $0x20] ss:$8 sps:$4 sm:$0xff]   ;;  %v1613_v30 = vld [vmem:[%s1746_s22 + $0xb4] ss:$8 sps:$4 sm:$0xff]  }
  0x20   : > { %v1609_v28 = vld [vmem:[%s1746_s22 + $0xa0] ss:$8 sps:$4 sm:$0xff]   ;;  %v1594_v31 = vld [vmem:[%s1746_s22 + $0x30] ss:$8 sps:$4 sm:$0xff]   ;;  %v1598_v33 = vld [vmem:[%s1746_s22 + $0x44] ss:$8 sps:$4 sm:$0xff]  }
  0x21   : > { %v1615_v32 = vld [vmem:[%s1746_s22 + $0xb0] ss:$8 sps:$4 sm:$0xff]   ;;  %v1619_v34 = vld [vmem:[%s1746_s22 + $0xc4] ss:$8 sps:$4 sm:$0xff]   ;;  %v1600_v35 = vld [vmem:[%s1746_s22 + $0x40] ss:$8 sps:$4 sm:$0xff]  }
  0x22   : > { %654 = vmatpush1.bf16.msra.mxu0 %v1575_v5  ;;  %1537 = vmatpush1.bf16.msra.mxu1 %v1575_v5  ;;  %v1621_v36 = vld [vmem:[%s1746_s22 + $0xc0] ss:$8 sps:$4 sm:$0xff]   ;;  %v1604_v37 = vld [vmem:[%s1746_s22 + $0x54] ss:$8 sps:$4 sm:$0xff]   ;;  %v1606_v39 = vld [vmem:[%s1746_s22 + $0x50] ss:$8 sps:$4 sm:$0xff]  }
  0x23   : > { %655 = vmatprep.subr.bf16.mxu0 %v1657_v3  ;;  %1528 = vmatprep.subr.bf16.mxu1 %v1657_v3  ;;  %v1622_v38 = vld [vmem:[%s1746_s22 + $0xd4] ss:$8 sps:$4 sm:$0xff]   ;;  %v1624_v40 = vld [vmem:[%s1746_s22 + $0xd0] ss:$8 sps:$4 sm:$0xff]   ;;  %v1610_v41 = vld [vmem:[%s1746_s22 + $0x64] ss:$8 sps:$4 sm:$0xff]  }
  0x24   : > { %v1625_v42 = vld [vmem:[%s1746_s22 + $0xe4] ss:$8 sps:$4 sm:$0xff]   ;;  %v1612_v43 = vld [vmem:[%s1746_s22 + $0x60] ss:$8 sps:$4 sm:$0xff]   ;;  %v1616_v45 = vld [vmem:[%s1746_s22 + $0x74] ss:$8 sps:$4 sm:$0xff]  }
  0x25   : > { %v1627_v44 = vld [vmem:[%s1746_s22 + $0xe0] ss:$8 sps:$4 sm:$0xff]   ;;  %v1628_v46 = vld [vmem:[%s1746_s22 + $0xf4] ss:$8 sps:$4 sm:$0xff]   ;;  %v1618_v47 = vld [vmem:[%s1746_s22 + $0x70] ss:$8 sps:$4 sm:$0xff]  }
  0x26   : > { %656 = vmatpush1.bf16.msra.mxu0 %v1576_v6  ;;  %1538 = vmatpush1.bf16.msra.mxu1 %v1576_v6  ;;  %v1630_v48 = vld [vmem:[%s1746_s22 + $0xf0] ss:$8 sps:$4 sm:$0xff]   ;;  %v341_v49 = vld [vmem:[#allocation2] sm:$0xff]  ;;  %v342_v52 = vld [vmem:[#allocation2 + $0x8] sm:$0xff] }
  0x27   : > { %657 = vmatprep.subr.bf16.mxu0 %v1657_v3  ;;  %1529 = vmatprep.subr.bf16.mxu1 %v1657_v3  ;;  %v357_v50 = vld [vmem:[#allocation2 + $0x80] sm:$0xff]  ;;  %v358_v54 = vld [vmem:[#allocation2 + $0x88] sm:$0xff]  ;;  %v343_v1 = vld [vmem:[#allocation2 + $0x10] sm:$0xff] }
  0x28   : > { %v359_v2 = vld [vmem:[#allocation2 + $0x90] sm:$0xff]  ;;  %v344_v4 = vld [vmem:[#allocation2 + $0x18] sm:$0xff] }
  0x2a   : > { %658 = vmatpush1.bf16.msra.mxu0 %v1577_v8  ;;  %1539 = vmatpush1.bf16.msra.mxu1 %v1577_v8 }
  0x2b   : > { %659 = vmatprep.subr.bf16.mxu0 %v1657_v3  ;;  %1530 = vmatprep.subr.bf16.mxu1 %v1657_v3 }
  0x2e   : > { %660 = vmatpush1.bf16.msra.mxu0 %v1578_v10  ;;  %1540 = vmatpush1.bf16.msra.mxu1 %v1578_v10  ;;  %v360_v10 = vld [vmem:[#allocation2 + $0x98] sm:$0xff] }
  0x2f   : > { %661 = vmatprep.subr.bf16.mxu0 %v1657_v3  ;;  %1531 = vmatprep.subr.bf16.mxu1 %v1657_v3 }
  0x32   : > { %662 = vmatpush1.bf16.msra.mxu0 %v1579_v11  ;;  %1541 = vmatpush1.bf16.msra.mxu1 %v1579_v11 }
  0x33   : > { %663 = vmatprep.subr.bf16.mxu0 %v1657_v3  ;;  %1532 = vmatprep.subr.bf16.mxu1 %v1657_v3 }
  0x36   : > { %664 = vmatpush1.bf16.msra.mxu0 %v1580_v12  ;;  %1542 = vmatpush1.bf16.msra.mxu1 %v1580_v12 }
  0x37   : > { %665 = vmatprep.subr.bf16.mxu0 %v1657_v3  ;;  %1533 = vmatprep.subr.bf16.mxu1 %v1657_v3 }
  0x3a   : > { %666 = vmatpush1.bf16.msra.mxu0 %v1581_v15  ;;  %1543 = vmatpush1.bf16.msra.mxu1 %v1581_v15 }
  0x3b   : > { %667 = vmatprep.subr.bf16.mxu0 %v1657_v3  ;;  %1534 = vmatprep.subr.bf16.mxu1 %v1657_v3 }
  0x3e   : > { %668 = vmatpush1.bf16.msra.mxu0 %v647_v18  ;;  %1544 = vmatpush1.bf16.msra.mxu1 %v647_v18 }
  0x41   : > { %682 = vmatmul.mubr.bf16.vlgmr.msra.gmra.mrb[0].mxu0 %v1583_v19  ;;  %746 = vmatmul.mubr.bf16.vlgmr.msra.gmra.mrb[0].mxu1 %v1595_v20 }
  0x42   : > { %1439 = vmatprep.mubr.msk.bf16.mxu0 %vm593_vm2, %v1586_v21  ;;  %1447 = vmatprep.mubr.msk.bf16.mxu1 %vm593_vm2, %v1601_v22 }
  0x49   : > { %690 = vmatmul.mubr.bf16.gmra.mrb[4].mxu0 %v1588_v23  ;;  %754 = vmatmul.mubr.bf16.gmra.mrb[4].mxu1 %v1603_v24  ;;  %v345_v24 = vld [vmem:[#allocation2 + $0x20] sm:$0xff] }
  0x4a   : > { %1440 = vmatprep.mubr.msk.bf16.mxu0 %vm593_vm2, %v1589_v25  ;;  %1448 = vmatprep.mubr.msk.bf16.mxu1 %vm593_vm2, %v1607_v26  ;;  %v361_v26 = vld [vmem:[#allocation2 + $0xa0] sm:$0xff] }
  0x51   : > { %698 = vmatmul.mubr.bf16.gmra.mrb[8].mxu0 %v1591_v27  ;;  %762 = vmatmul.mubr.bf16.gmra.mrb[8].mxu1 %v1609_v28  ;;  %v346_v28 = vld [vmem:[#allocation2 + $0x28] sm:$0xff] }
  0x52   : > { %1441 = vmatprep.mubr.msk.bf16.mxu0 %vm593_vm2, %v1592_v29  ;;  %1449 = vmatprep.mubr.msk.bf16.mxu1 %vm593_vm2, %v1613_v30 }
  0x59   : > { %706 = vmatmul.mubr.bf16.gmra.mrb[12].mxu0 %v1594_v31  ;;  %770 = vmatmul.mubr.bf16.gmra.mrb[12].mxu1 %v1615_v32 }
  0x5a   : > { %1442 = vmatprep.mubr.msk.bf16.mxu0 %vm593_vm2, %v1598_v33  ;;  %1450 = vmatprep.mubr.msk.bf16.mxu1 %vm593_vm2, %v1619_v34 }
  0x61   : > { %714 = vmatmul.mubr.bf16.gmra.mrb[16].mxu0 %v1600_v35  ;;  %778 = vmatmul.mubr.bf16.gmra.mrb[16].mxu1 %v1621_v36 }
  0x62   : > { %1443 = vmatprep.mubr.msk.bf16.mxu0 %vm593_vm2, %v1604_v37  ;;  %1451 = vmatprep.mubr.msk.bf16.mxu1 %vm593_vm2, %v1622_v38 }
  0x69   : > { %722 = vmatmul.mubr.bf16.gmra.mrb[20].mxu0 %v1606_v39  ;;  %786 = vmatmul.mubr.bf16.gmra.mrb[20].mxu1 %v1624_v40 }
  0x6a   : > { %1444 = vmatprep.mubr.msk.bf16.mxu0 %vm593_vm2, %v1610_v41  ;;  %1452 = vmatprep.mubr.msk.bf16.mxu1 %vm593_vm2, %v1625_v42 }
  0x71   : > { %730 = vmatmul.mubr.bf16.gmra.mrb[24].mxu0 %v1612_v43  ;;  %794 = vmatmul.mubr.bf16.gmra.mrb[24].mxu1 %v1627_v44  ;;  %v362_v44 = vld [vmem:[#allocation2 + $0xa8] sm:$0xff] }
  0x72   : > { %1445 = vmatprep.mubr.msk.bf16.mxu0 %vm593_vm2, %v1616_v45  ;;  %1453 = vmatprep.mubr.msk.bf16.mxu1 %vm593_vm2, %v1628_v46 }
  0x79   : > { %738 = vmatmul.mubr.bf16.gmra.mrb[28].mxu0 %v1618_v47  ;;  %802 = vmatmul.mubr.bf16.gmra.mrb[28].mxu1 %v1630_v48  ;;  %v347_v47 = vld [vmem:[#allocation2 + $0x30] sm:$0xff] }
 0x114   : > { %v683_v51 = vpop.f32.mrb[0].mxu0  ;;  %v747_v53 = vpop.f32.mrb[0].mxu1 }
 0x115   : > { %v810_v55 = vadd.f32 %v683_v51, %v341_v49  ;;  %v685_v56 = vpop.f32.mrb[1].mxu0  ;;  %v826_v57 = vadd.f32 %v747_v53, %v357_v50  ;;  %v749_v58 = vpop.f32.mrb[1].mxu1  ;;  %v363_v49 = vld [vmem:[#allocation2 + $0xb0] sm:$0xff] }
 0x116   : > { %v686_v59 = vpop.f32.mrb[2].mxu0  ;;  %v750_v60 = vpop.f32.mrb[2].mxu1 }
 0x117   : > { %843 = vst.msk [vmem:[#allocation2] sm:$0xff] %vm269_vm0, %v810_v55  ;;  %v811_v61 = vadd.f32 %v686_v59, %v342_v52  ;;  %v688_v62 = vpop.f32.mrb[3].mxu0  ;;  %859 = vst.msk [vmem:[#allocation2 + $0x80] sm:$0xff] %vm269_vm0, %v826_v57  ;;  %v827_v63 = vadd.f32 %v750_v60, %v358_v54  ;;  %v752_v0 = vpop.f32.mrb[3].mxu1  ;;  %v348_v52 = vld [vmem:[#allocation2 + $0x38] sm:$0xff] }
 0x119   : > { %844 = vst.msk [vmem:[#allocation2 + $0x8] sm:$0xff] %vm269_vm0, %v811_v61  ;;  %860 = vst.msk [vmem:[#allocation2 + $0x88] sm:$0xff] %vm269_vm0, %v827_v63 }
 0x11c   : > { %v691_v3 = vpop.f32.mrb[4].mxu0  ;;  %v755_v5 = vpop.f32.mrb[4].mxu1 }
 0x11d   : > { %v812_v6 = vadd.f32 %v691_v3, %v343_v1  ;;  %v693_v7 = vpop.f32.mrb[5].mxu0  ;;  %v828_v8 = vadd.f32 %v755_v5, %v359_v2  ;;  %v757_v9 = vpop.f32.mrb[5].mxu1  ;;  %v364_v5 = vld [vmem:[#allocation2 + $0xb8] sm:$0xff] }
 0x11e   : > { %v1839_v11 = vld [vmem:[#allocation2] sm:$0xff]  ;;  %v694_v12 = vpop.f32.mrb[6].mxu0  ;;  %v758_v14 = vpop.f32.mrb[6].mxu1 }
 0x11f   : > { %v1841_v13 = vld [vmem:[#allocation2 + $0x80] sm:$0xff]  ;;  %v1492_v15 = vpack.c.bf16 %v1839_v11, %v1839_v11  ;;  %845 = vst.msk [vmem:[#allocation2 + $0x10] sm:$0xff] %vm269_vm0, %v812_v6  ;;  %v813_v16 = vadd.f32 %v694_v12, %v344_v4  ;;  %v696_v17 = vpop.f32.mrb[7].mxu0  ;;  %861 = vst.msk [vmem:[#allocation2 + $0x90] sm:$0xff] %vm269_vm0, %v828_v8  ;;  %v760_v18 = vpop.f32.mrb[7].mxu1  ;;  %v829_v22 = vadd.f32 %v758_v14, %v360_v10  ;;  %v1071_v9 = vsel %vm269_vm0, %v1839_v11, 0.0 }
 0x120   : > { %v879_v19 = vld [vmem:[#allocation2 + $0x8] sm:$0xff]  ;;  %v1508_v20 = vpack.c.bf16 %v1841_v13, %v1841_v13  ;;  %v1140_v59 = vmul.f32 %v1839_v11, %v1839_v11  ;;  %v365_v11 = vld [vmem:[#allocation2 + $0xc0] sm:$0xff] }
 0x121   : > { %v1849_v21 = vld [vmem:[#allocation2 + $0x88] sm:$0xff]  ;;  %1039 = vst.msk [vmem:[%s1751_s25] sm:$0xf] %vm1038_vm5, %v1492_v15  ;;  %v1493_v23 = vpack.c.bf16 %v879_v19, %v879_v19  ;;  %v1141_v54 = vmul.f32 %v879_v19, %v879_v19  ;;  %v1072_v0 = vsel %vm269_vm0, %v879_v19, 0.0 }
 0x122   : > { %846 = vst.msk [vmem:[#allocation2 + $0x18] sm:$0xff] %vm269_vm0, %v813_v16  ;;  %v1509_v25 = vpack.c.bf16 %v1849_v21, %v1849_v21  ;;  %862 = vst.msk [vmem:[#allocation2 + $0x98] sm:$0xff] %vm269_vm0, %v829_v22  ;;  %v1073_v15 = vadd.f32 %v1072_v0, %v1071_v9  ;;  %v349_v16 = vld [vmem:[#allocation2 + $0x40] sm:$0xff]  ;;  %v1172_v18 = vsel %vm269_vm0, %v1140_v59, 0.0  ;;  %v367_v59 = vld [vmem:[#allocation2 + $0xd0] sm:$0xff] }
 0x123   : > { %1055 = vst.msk [vmem:[%s1751_s25 + $0x40] sm:$0xf] %vm1038_vm5, %v1508_v20  ;;  %1040 = vst.msk [vmem:[%s1751_s25 + $0x4] sm:$0xf] %vm1038_vm5, %v1493_v23  ;;  %v1173_v10 = vsel %vm269_vm0, %v1141_v54, 0.0 }
 0x124   : > { %v699_v27 = vpop.f32.mrb[8].mxu0  ;;  %1056 = vst.msk [vmem:[%s1751_s25 + $0x44] sm:$0xf] %vm1038_vm5, %v1509_v25  ;;  %v763_v29 = vpop.f32.mrb[8].mxu1  ;;  %v1174_v22 = vadd.f32 %v1173_v10, %v1172_v18  ;;  %v350_v25 = vld [vmem:[#allocation2 + $0x48] sm:$0xff] }
 0x125   : > { %v814_v30 = vadd.f32 %v699_v27, %v345_v24  ;;  %v701_v31 = vpop.f32.mrb[9].mxu0  ;;  %v830_v32 = vadd.f32 %v763_v29, %v361_v26  ;;  %v765_v33 = vpop.f32.mrb[9].mxu1 }
 0x126   : > { %v880_v34 = vld [vmem:[#allocation2 + $0x10] sm:$0xff]  ;;  %v702_v35 = vpop.f32.mrb[10].mxu0  ;;  %v766_v37 = vpop.f32.mrb[10].mxu1 }
 0x127   : > { %v1863_v36 = vld [vmem:[#allocation2 + $0x90] sm:$0xff]  ;;  %v1494_v38 = vpack.c.bf16 %v880_v34, %v880_v34  ;;  %847 = vst.msk [vmem:[#allocation2 + $0x20] sm:$0xff] %vm269_vm0, %v814_v30  ;;  %v815_v39 = vadd.f32 %v702_v35, %v346_v28  ;;  %v704_v40 = vpop.f32.mrb[11].mxu0  ;;  %863 = vst.msk [vmem:[#allocation2 + $0xa0] sm:$0xff] %vm269_vm0, %v830_v32  ;;  %v768_v41 = vpop.f32.mrb[11].mxu1  ;;  %v831_v50 = vadd.f32 %v766_v37, %v362_v44  ;;  %v1074_v12 = vsel %vm269_vm0, %v880_v34, 0.0 }
 0x128   : > { %v1510_v43 = vpack.c.bf16 %v1863_v36, %v1863_v36  ;;  %v1142_v1 = vmul.f32 %v880_v34, %v880_v34  ;;  %v1075_v23 = vadd.f32 %v1074_v12, %v1073_v15 }
 0x129   : > { %v881_v42 = vld [vmem:[#allocation2 + $0x18] sm:$0xff]  ;;  %1041 = vst.msk [vmem:[%s1751_s25 + $0x8] sm:$0xf] %vm1038_vm5, %v1494_v38 }
 0x12a   : > { %v1495_v45 = vpack.c.bf16 %v881_v42, %v881_v42  ;;  %848 = vst.msk [vmem:[#allocation2 + $0x28] sm:$0xff] %vm269_vm0, %v815_v39  ;;  %v1872_v46 = vld [vmem:[#allocation2 + $0x98] sm:$0xff]  ;;  %864 = vst.msk [vmem:[#allocation2 + $0xa8] sm:$0xff] %vm269_vm0, %v831_v50  ;;  %v1175_v19 = vsel %vm269_vm0, %v1142_v1, 0.0  ;;  %v1143_v20 = vmul.f32 %v881_v42, %v881_v42  ;;  %v1076_v28 = vsel %vm269_vm0, %v881_v42, 0.0 }
 0x12b   : > { %1057 = vst.msk [vmem:[%s1751_s25 + $0x48] sm:$0xf] %vm1038_vm5, %v1510_v43  ;;  %v1511_v48 = vpack.c.bf16 %v1872_v46, %v1872_v46  ;;  %v1176_v34 = vadd.f32 %v1175_v19, %v1174_v22 }
 0x12c   : > { %1042 = vst.msk [vmem:[%s1751_s25 + $0xc] sm:$0xf] %vm1038_vm5, %v1495_v45  ;;  %v707_v51 = vpop.f32.mrb[12].mxu0  ;;  %v771_v53 = vpop.f32.mrb[12].mxu1  ;;  %v1177_v41 = vsel %vm269_vm0, %v1143_v20, 0.0 }
 0x12d   : > { %1058 = vst.msk [vmem:[%s1751_s25 + $0x4c] sm:$0xf] %vm1038_vm5, %v1511_v48  ;;  %v816_v55 = vadd.f32 %v707_v51, %v347_v47  ;;  %v709_v56 = vpop.f32.mrb[13].mxu0  ;;  %v832_v57 = vadd.f32 %v771_v53, %v363_v49  ;;  %v773_v58 = vpop.f32.mrb[13].mxu1  ;;  %v366_v47 = vld [vmem:[#allocation2 + $0xc8] sm:$0xff]  ;;  %v1077_v49 = vadd.f32 %v1076_v28, %v1075_v23  ;;  %v368_v23 = vld [vmem:[#allocation2 + $0xd8] sm:$0xff] }
 0x12e   : > { %v882_v60 = vld [vmem:[#allocation2 + $0x20] sm:$0xff]  ;;  %v710_v61 = vpop.f32.mrb[14].mxu0  ;;  %v774_v63 = vpop.f32.mrb[14].mxu1 }
 0x12f   : > { %v1885_v62 = vld [vmem:[#allocation2 + $0xa0] sm:$0xff]  ;;  %v1496_v2 = vpack.c.bf16 %v882_v60, %v882_v60  ;;  %849 = vst.msk [vmem:[#allocation2 + $0x30] sm:$0xff] %vm269_vm0, %v816_v55  ;;  %v817_v3 = vadd.f32 %v710_v61, %v348_v52  ;;  %v712_v4 = vpop.f32.mrb[15].mxu0  ;;  %865 = vst.msk [vmem:[#allocation2 + $0xb0] sm:$0xff] %vm269_vm0, %v832_v57  ;;  %v776_v6 = vpop.f32.mrb[15].mxu1  ;;  %v833_v17 = vadd.f32 %v774_v63, %v364_v5  ;;  %v1078_v42 = vsel %vm269_vm0, %v882_v60, 0.0 }
 0x130   : > { %v1512_v8 = vpack.c.bf16 %v1885_v62, %v1885_v62  ;;  %v1144_v29 = vmul.f32 %v882_v60, %v882_v60  ;;  %v1178_v55 = vadd.f32 %v1177_v41, %v1176_v34  ;;  %v1079_v56 = vadd.f32 %v1078_v42, %v1077_v49  ;;  %v351_v57 = vld [vmem:[#allocation2 + $0x50] sm:$0xff]  ;;  %v353_v34 = vld [vmem:[#allocation2 + $0x60] sm:$0xff] }
 0x131   : > { %v883_v7 = vld [vmem:[#allocation2 + $0x28] sm:$0xff]  ;;  %1043 = vst.msk [vmem:[%s1751_s25 + $0x10] sm:$0xf] %vm1038_vm5, %v1496_v2  ;;  %v352_v2 = vld [vmem:[#allocation2 + $0x58] sm:$0xff] }
 0x132   : > { %v1497_v14 = vpack.c.bf16 %v883_v7, %v883_v7  ;;  %850 = vst.msk [vmem:[#allocation2 + $0x38] sm:$0xff] %vm269_vm0, %v817_v3  ;;  %v1905_v26 = vld [vmem:[#allocation2 + $0xa8] sm:$0xff]  ;;  %866 = vst.msk [vmem:[#allocation2 + $0xb8] sm:$0xff] %vm269_vm0, %v833_v17  ;;  %v1179_v52 = vsel %vm269_vm0, %v1144_v29, 0.0  ;;  %v1145_v53 = vmul.f32 %v883_v7, %v883_v7  ;;  %v1080_v60 = vsel %vm269_vm0, %v883_v7, 0.0 }
 0x133   : > { %1059 = vst.msk [vmem:[%s1751_s25 + $0x50] sm:$0xf] %vm1038_vm5, %v1512_v8  ;;  %v1513_v32 = vpack.c.bf16 %v1905_v26, %v1905_v26  ;;  %v1180_v0 = vadd.f32 %v1179_v52, %v1178_v55  ;;  %v1081_v12 = vadd.f32 %v1080_v60, %v1079_v56 }
 0x134   : > { %1044 = vst.msk [vmem:[%s1751_s25 + $0x14] sm:$0xf] %vm1038_vm5, %v1497_v14  ;;  %v715_v24 = vpop.f32.mrb[16].mxu0  ;;  %v779_v27 = vpop.f32.mrb[16].mxu1  ;;  %v1181_v5 = vsel %vm269_vm0, %v1145_v53, 0.0 }
 0x135   : > { %v818_v30 = vadd.f32 %v715_v24, %v349_v16  ;;  %v717_v31 = vpop.f32.mrb[17].mxu0  ;;  %v781_v33 = vpop.f32.mrb[17].mxu1  ;;  %v834_v39 = vadd.f32 %v779_v27, %v365_v11  ;;  %1060 = vst.msk [vmem:[%s1751_s25 + $0x54] sm:$0xf] %vm1038_vm5, %v1513_v32 }
 0x136   : > { %v884_v35 = vld [vmem:[#allocation2 + $0x30] sm:$0xff]  ;;  %v718_v37 = vpop.f32.mrb[18].mxu0  ;;  %v782_v40 = vpop.f32.mrb[18].mxu1 }
 0x137   : > { %v1911_v38 = vld [vmem:[#allocation2 + $0xb0] sm:$0xff]  ;;  %v1498_v43 = vpack.c.bf16 %v884_v35, %v884_v35  ;;  %851 = vst.msk [vmem:[#allocation2 + $0x40] sm:$0xff] %vm269_vm0, %v818_v30  ;;  %v819_v44 = vadd.f32 %v718_v37, %v350_v25  ;;  %v720_v45 = vpop.f32.mrb[19].mxu0  ;;  %v784_v48 = vpop.f32.mrb[19].mxu1  ;;  %867 = vst.msk [vmem:[#allocation2 + $0xc0] sm:$0xff] %vm269_vm0, %v834_v39  ;;  %v835_v58 = vadd.f32 %v782_v40, %v366_v47  ;;  %v1082_v6 = vsel %vm269_vm0, %v884_v35, 0.0 }
 0x138   : > { %v1514_v51 = vpack.c.bf16 %v1911_v38, %v1911_v38  ;;  %v1146_v61 = vmul.f32 %v884_v35, %v884_v35  ;;  %v1182_v25 = vadd.f32 %v1181_v5, %v1180_v0  ;;  %v1083_v27 = vadd.f32 %v1082_v6, %v1081_v12  ;;  %v369_v37 = vld [vmem:[#allocation2 + $0xe0] sm:$0xff] }
 0x139   : > { %v885_v50 = vld [vmem:[#allocation2 + $0x38] sm:$0xff]  ;;  %1045 = vst.msk [vmem:[%s1751_s25 + $0x18] sm:$0xf] %vm1038_vm5, %v1498_v43 }
 0x13a   : > { %v1499_v54 = vpack.c.bf16 %v885_v50, %v885_v50  ;;  %852 = vst.msk [vmem:[#allocation2 + $0x48] sm:$0xff] %vm269_vm0, %v819_v44  ;;  %v1930_v63 = vld [vmem:[#allocation2 + $0xb8] sm:$0xff]  ;;  %868 = vst.msk [vmem:[#allocation2 + $0xc8] sm:$0xff] %vm269_vm0, %v835_v58  ;;  %v1183_v17 = vsel %vm269_vm0, %v1146_v61, 0.0  ;;  %v1147_v18 = vmul.f32 %v885_v50, %v885_v50  ;;  %v1084_v30 = vsel %vm269_vm0, %v885_v50, 0.0  ;;  %v354_v44 = vld [vmem:[#allocation2 + $0x68] sm:$0xff] }
 0x13b   : > { %1061 = vst.msk [vmem:[%s1751_s25 + $0x58] sm:$0xf] %vm1038_vm5, %v1514_v51  ;;  %v1515_v3 = vpack.c.bf16 %v1930_v63, %v1930_v63  ;;  %v1184_v33 = vadd.f32 %v1183_v17, %v1182_v25  ;;  %v1085_v42 = vadd.f32 %v1084_v30, %v1083_v27  ;;  %v371_v17 = vld [vmem:[#allocation2 + $0xf0] sm:$0xff] }
 0x13c   : > { %1046 = vst.msk [vmem:[%s1751_s25 + $0x1c] sm:$0xf] %vm1038_vm5, %v1499_v54  ;;  %v723_v1 = vpop.f32.mrb[20].mxu0  ;;  %v787_v4 = vpop.f32.mrb[20].mxu1  ;;  %v1185_v39 = vsel %vm269_vm0, %v1147_v18, 0.0 }
 0x13d   : > { %v820_v7 = vadd.f32 %v723_v1, %v351_v57  ;;  %v725_v8 = vpop.f32.mrb[21].mxu0  ;;  %v836_v9 = vadd.f32 %v787_v4, %v367_v59  ;;  %v789_v10 = vpop.f32.mrb[21].mxu1  ;;  %1062 = vst.msk [vmem:[%s1751_s25 + $0x5c] sm:$0xf] %vm1038_vm5, %v1515_v3  ;;  %v1186_v54 = vadd.f32 %v1185_v39, %v1184_v33  ;;  %v370_v3 = vld [vmem:[#allocation2 + $0xe8] sm:$0xff] }
 0x13e   : > { %v886_v14 = vld [vmem:[#allocation2 + $0x40] sm:$0xff]  ;;  %v726_v15 = vpop.f32.mrb[22].mxu0  ;;  %v790_v16 = vpop.f32.mrb[22].mxu1 }
 0x13f   : > { %v1500_v19 = vpack.c.bf16 %v886_v14, %v886_v14  ;;  %853 = vst.msk [vmem:[#allocation2 + $0x50] sm:$0xff] %vm269_vm0, %v820_v7  ;;  %v821_v20 = vadd.f32 %v726_v15, %v352_v2  ;;  %v728_v11 = vpop.f32.mrb[23].mxu0  ;;  %v1941_v22 = vld [vmem:[#allocation2 + $0xc0] sm:$0xff]  ;;  %869 = vst.msk [vmem:[#allocation2 + $0xd0] sm:$0xff] %vm269_vm0, %v836_v9  ;;  %v792_v24 = vpop.f32.mrb[23].mxu1  ;;  %v1148_v31 = vmul.f32 %v886_v14, %v886_v14  ;;  %v1086_v40 = vsel %vm269_vm0, %v886_v14, 0.0 }
 0x140   : > { %v1516_v29 = vpack.c.bf16 %v1941_v22, %v1941_v22  ;;  %v837_v35 = vadd.f32 %v790_v16, %v368_v23  ;;  %v1087_v55 = vadd.f32 %v1086_v40, %v1085_v42  ;;  %v355_v15 = vld [vmem:[#allocation2 + $0x70] sm:$0xff]  ;;  %v356_v24 = vld [vmem:[#allocation2 + $0x78] sm:$0xff] }
 0x141   : > { %v887_v28 = vld [vmem:[#allocation2 + $0x48] sm:$0xff]  ;;  %1047 = vst.msk [vmem:[%s1751_s25 + $0x20] sm:$0xf] %vm1038_vm5, %v1500_v19  ;;  %v1187_v48 = vsel %vm269_vm0, %v1148_v31, 0.0 }
 0x142   : > { %v1501_v32 = vpack.c.bf16 %v887_v28, %v887_v28  ;;  %854 = vst.msk [vmem:[#allocation2 + $0x58] sm:$0xff] %vm269_vm0, %v821_v20  ;;  %v1956_v41 = vld [vmem:[#allocation2 + $0xc8] sm:$0xff]  ;;  %870 = vst.msk [vmem:[#allocation2 + $0xd8] sm:$0xff] %vm269_vm0, %v837_v35  ;;  %v1149_v49 = vmul.f32 %v887_v28, %v887_v28  ;;  %v1088_v60 = vsel %vm269_vm0, %v887_v28, 0.0  ;;  %v1188_v5 = vadd.f32 %v1187_v48, %v1186_v54  ;;  %v372_v48 = vld [vmem:[#allocation2 + $0xf8] sm:$0xff] }
 0x143   : > { %1063 = vst.msk [vmem:[%s1751_s25 + $0x60] sm:$0xf] %vm1038_vm5, %v1516_v29  ;;  %v1517_v45 = vpack.c.bf16 %v1956_v41, %v1956_v41  ;;  %v1089_v12 = vadd.f32 %v1088_v60, %v1087_v55 }
 0x144   : > { %1048 = vst.msk [vmem:[%s1751_s25 + $0x24] sm:$0xf] %vm1038_vm5, %v1501_v32  ;;  %v731_v43 = vpop.f32.mrb[24].mxu0  ;;  %v795_v47 = vpop.f32.mrb[24].mxu1  ;;  %v1189_v8 = vsel %vm269_vm0, %v1149_v49, 0.0 }
 0x145   : > { %v822_v50 = vadd.f32 %v731_v43, %v353_v34  ;;  %v733_v51 = vpop.f32.mrb[25].mxu0  ;;  %v838_v52 = vadd.f32 %v795_v47, %v369_v37  ;;  %v797_v53 = vpop.f32.mrb[25].mxu1  ;;  %1064 = vst.msk [vmem:[%s1751_s25 + $0x64] sm:$0xf] %vm1038_vm5, %v1517_v45  ;;  %v1190_v20 = vadd.f32 %v1189_v8, %v1188_v5 }
 0x146   : > { %v888_v56 = vld [vmem:[#allocation2 + $0x50] sm:$0xff]  ;;  %v734_v57 = vpop.f32.mrb[26].mxu0  ;;  %v798_v59 = vpop.f32.mrb[26].mxu1 }
 0x147   : > { %v1964_v58 = vld [vmem:[#allocation2 + $0xd0] sm:$0xff]  ;;  %v1502_v61 = vpack.c.bf16 %v888_v56, %v888_v56  ;;  %v1150_v0 = vmul.f32 %v888_v56, %v888_v56  ;;  %855 = vst.msk [vmem:[#allocation2 + $0x60] sm:$0xff] %vm269_vm0, %v822_v50  ;;  %v823_v1 = vadd.f32 %v734_v57, %v354_v44  ;;  %v736_v2 = vpop.f32.mrb[27].mxu0  ;;  %871 = vst.msk [vmem:[#allocation2 + $0xe0] sm:$0xff] %vm269_vm0, %v838_v52  ;;  %v800_v4 = vpop.f32.mrb[27].mxu1  ;;  %v1090_v9 = vsel %vm269_vm0, %v888_v56, 0.0 }
 0x148   : > { %v1518_v7 = vpack.c.bf16 %v1964_v58, %v1964_v58  ;;  %v839_v16 = vadd.f32 %v798_v59, %v370_v3  ;;  %v1091_v11 = vadd.f32 %v1090_v9, %v1089_v12  ;;  %v1156_v9 = vmul.f32 %v1841_v13, %v1841_v13 }
 0x149   : > { %v889_v6 = vld [vmem:[#allocation2 + $0x58] sm:$0xff]  ;;  %1049 = vst.msk [vmem:[%s1751_s25 + $0x28] sm:$0xf] %vm1038_vm5, %v1502_v61  ;;  %v1191_v18 = vsel %vm269_vm0, %v1150_v0, 0.0 }
 0x14a   : > { %v1503_v10 = vpack.c.bf16 %v889_v6, %v889_v6  ;;  %856 = vst.msk [vmem:[#allocation2 + $0x68] sm:$0xff] %vm269_vm0, %v823_v1  ;;  %v1151_v14 = vmul.f32 %v889_v6, %v889_v6  ;;  %v1981_v19 = vld [vmem:[#allocation2 + $0xd8] sm:$0xff]  ;;  %872 = vst.msk [vmem:[#allocation2 + $0xe8] sm:$0xff] %vm269_vm0, %v839_v16  ;;  %v1092_v28 = vsel %vm269_vm0, %v889_v6, 0.0  ;;  %v1192_v33 = vadd.f32 %v1191_v18, %v1190_v20 }
 0x14b   : > { %1065 = vst.msk [vmem:[%s1751_s25 + $0x68] sm:$0xf] %vm1038_vm5, %v1518_v7  ;;  %v1519_v25 = vpack.c.bf16 %v1981_v19, %v1981_v19  ;;  %v1093_v50 = vadd.f32 %v1092_v28, %v1091_v11 }
 0x14c   : > { %1050 = vst.msk [vmem:[%s1751_s25 + $0x2c] sm:$0xf] %vm1038_vm5, %v1503_v10  ;;  %v739_v23 = vpop.f32.mrb[28].mxu0  ;;  %v803_v27 = vpop.f32.mrb[28].mxu1  ;;  %v1193_v34 = vsel %vm269_vm0, %v1151_v14, 0.0 }
 0x14d   : > { %v824_v29 = vadd.f32 %v739_v23, %v355_v15  ;;  %v741_v30 = vpop.f32.mrb[29].mxu0  ;;  %v840_v31 = vadd.f32 %v803_v27, %v371_v17  ;;  %v805_v32 = vpop.f32.mrb[29].mxu1  ;;  %1066 = vst.msk [vmem:[%s1751_s25 + $0x6c] sm:$0xf] %vm1038_vm5, %v1519_v25  ;;  %v1194_v56 = vadd.f32 %v1193_v34, %v1192_v33  ;;  %v1157_v25 = vmul.f32 %v1849_v21, %v1849_v21 }
 0x14e   : > { %v890_v35 = vld [vmem:[#allocation2 + $0x60] sm:$0xff]  ;;  %v742_v37 = vpop.f32.mrb[30].mxu0  ;;  %v806_v40 = vpop.f32.mrb[30].mxu1  ;;  %v1203_v32 = vsel %vm269_vm0, %v1156_v9, 0.0  ;;  %v1104_v33 = vsel %vm269_vm0, %v1849_v21, 0.0  ;;  %v1108_v21 = vsel %vm269_vm0, %v1872_v46, 0.0 }
 0x14f   : > { %v1990_v39 = vld [vmem:[#allocation2 + $0xe0] sm:$0xff]  ;;  %v1504_v42 = vpack.c.bf16 %v890_v35, %v890_v35  ;;  %v1094_v43 = vsel %vm269_vm0, %v890_v35, 0.0  ;;  %v1152_v44 = vmul.f32 %v890_v35, %v890_v35  ;;  %857 = vst.msk [vmem:[#allocation2 + $0x70] sm:$0xff] %vm269_vm0, %v824_v29  ;;  %v825_v45 = vadd.f32 %v742_v37, %v356_v24  ;;  %v744_v47 = vpop.f32.mrb[31].mxu0  ;;  %873 = vst.msk [vmem:[#allocation2 + $0xf0] sm:$0xff] %vm269_vm0, %v840_v31  ;;  %v808_v49 = vpop.f32.mrb[31].mxu1 }
 0x150   : > { %v1520_v52 = vpack.c.bf16 %v1990_v39, %v1990_v39  ;;  %v1095_v57 = vadd.f32 %v1094_v43, %v1093_v50  ;;  %v841_v59 = vadd.f32 %v806_v40, %v372_v48  ;;  %v1102_v24 = vsel %vm269_vm0, %v1841_v13, 0.0 }
 0x151   : > { %v891_v51 = vld [vmem:[#allocation2 + $0x68] sm:$0xff]  ;;  %1051 = vst.msk [vmem:[%s1751_s25 + $0x30] sm:$0xf] %vm1038_vm5, %v1504_v42  ;;  %v1195_v53 = vsel %vm269_vm0, %v1152_v44, 0.0  ;;  %v1158_v13 = vmul.f32 %v1863_v36, %v1863_v36  ;;  %v1205_v37 = vsel %vm269_vm0, %v1157_v25, 0.0  ;;  %v1106_v40 = vsel %vm269_vm0, %v1863_v36, 0.0 }
 0x152   : > { %v1505_v54 = vpack.c.bf16 %v891_v51, %v891_v51  ;;  %v1153_v55 = vmul.f32 %v891_v51, %v891_v51  ;;  %858 = vst.msk [vmem:[#allocation2 + $0x78] sm:$0xff] %vm269_vm0, %v825_v45  ;;  %v1096_v60 = vsel %vm269_vm0, %v891_v51, 0.0  ;;  %v2006_v61 = vld [vmem:[#allocation2 + $0xe8] sm:$0xff]  ;;  %v1196_v0 = vadd.f32 %v1195_v53, %v1194_v56  ;;  %874 = vst.msk [vmem:[#allocation2 + $0xf8] sm:$0xff] %vm269_vm0, %v841_v59 }
 0x153   : > { %1067 = vst.msk [vmem:[%s1751_s25 + $0x70] sm:$0xf] %vm1038_vm5, %v1520_v52  ;;  %v1521_v1 = vpack.c.bf16 %v2006_v61, %v2006_v61  ;;  %v1097_v3 = vadd.f32 %v1096_v60, %v1095_v57  ;;  %v1159_v42 = vmul.f32 %v1872_v46, %v1872_v46  ;;  %v1207_v45 = vsel %vm269_vm0, %v1158_v13, 0.0 }
 0x154   : > { %1052 = vst.msk [vmem:[%s1751_s25 + $0x34] sm:$0xf] %vm1038_vm5, %v1505_v54  ;;  %v1197_v2 = vsel %vm269_vm0, %v1153_v55, 0.0  ;;  %v1160_v47 = vmul.f32 %v1885_v62, %v1885_v62  ;;  %v1110_v36 = vsel %vm269_vm0, %v1885_v62, 0.0  ;;  %v1161_v51 = vmul.f32 %v1905_v26, %v1905_v26 }
 0x155   : > { %1068 = vst.msk [vmem:[%s1751_s25 + $0x74] sm:$0xf] %vm1038_vm5, %v1521_v1  ;;  %v1198_v10 = vadd.f32 %v1197_v2, %v1196_v0  ;;  %v1209_v50 = vsel %vm269_vm0, %v1159_v42, 0.0  ;;  %v1112_v46 = vsel %vm269_vm0, %v1905_v26, 0.0  ;;  %v1162_v55 = vmul.f32 %v1911_v38, %v1911_v38 }
 0x156   : > { %v892_v4 = vld [vmem:[#allocation2 + $0x70] sm:$0xff]  ;;  %v1211_v54 = vsel %vm269_vm0, %v1160_v47, 0.0  ;;  %v1213_v59 = vsel %vm269_vm0, %v1161_v51, 0.0  ;;  %v1114_v62 = vsel %vm269_vm0, %v1911_v38, 0.0  ;;  %v1163_v60 = vmul.f32 %v1930_v63, %v1930_v63 }
 0x157   : > { %v2014_v5 = vld [vmem:[#allocation2 + $0xf0] sm:$0xff]  ;;  %v1506_v6 = vpack.c.bf16 %v892_v4, %v892_v4  ;;  %v1098_v7 = vsel %vm269_vm0, %v892_v4, 0.0  ;;  %v1154_v8 = vmul.f32 %v892_v4, %v892_v4  ;;  %v1215_v2 = vsel %vm269_vm0, %v1162_v55, 0.0 }
 0x158   : > { %v1099_v12 = vadd.f32 %v1098_v7, %v1097_v3  ;;  %v1522_v15 = vpack.c.bf16 %v2014_v5, %v2014_v5  ;;  %v1116_v26 = vsel %vm269_vm0, %v1930_v63, 0.0  ;;  %v1164_v3 = vmul.f32 %v1941_v22, %v1941_v22 }
 0x159   : > { %v893_v14 = vld [vmem:[#allocation2 + $0x78] sm:$0xff]  ;;  %1053 = vst.msk [vmem:[%s1751_s25 + $0x38] sm:$0xf] %vm1038_vm5, %v1506_v6  ;;  %v1199_v16 = vsel %vm269_vm0, %v1154_v8, 0.0  ;;  %v1217_v7 = vsel %vm269_vm0, %v1163_v60, 0.0  ;;  %v1118_v38 = vsel %vm269_vm0, %v1941_v22, 0.0  ;;  %v1165_v8 = vmul.f32 %v1956_v41, %v1956_v41 }
 0x15a   : > { %v1507_v17 = vpack.c.bf16 %v893_v14, %v893_v14  ;;  %v1100_v18 = vsel %vm269_vm0, %v893_v14, 0.0  ;;  %v1155_v20 = vmul.f32 %v893_v14, %v893_v14  ;;  %v1200_v11 = vadd.f32 %v1199_v16, %v1198_v10  ;;  %1069 = vst.msk [vmem:[%s1751_s25 + $0x78] sm:$0xf] %vm1038_vm5, %v1522_v15  ;;  %v2034_v28 = vld [vmem:[#allocation2 + $0xf8] sm:$0xff] }
 0x15b   : > { %v1101_v23 = vadd.f32 %v1100_v18, %v1099_v12  ;;  %v1523_v31 = vpack.c.bf16 %v2034_v28, %v2034_v28  ;;  %v1219_v12 = vsel %vm269_vm0, %v1164_v3, 0.0  ;;  %v1120_v63 = vsel %vm269_vm0, %v1956_v41, 0.0 }
 0x15c   : > { %1054 = vst.msk [vmem:[%s1751_s25 + $0x3c] sm:$0xf] %vm1038_vm5, %v1507_v17  ;;  %v1201_v27 = vsel %vm269_vm0, %v1155_v20, 0.0  ;;  %v1166_v14 = vmul.f32 %v1964_v58, %v1964_v58  ;;  %v1221_v17 = vsel %vm269_vm0, %v1165_v8, 0.0  ;;  %v1122_v22 = vsel %vm269_vm0, %v1964_v58, 0.0 }
 0x15d   : > { %v1103_v29 = vadd.f32 %v1102_v24, %v1101_v23  ;;  %v1202_v30 = vadd.f32 %v1201_v27, %v1200_v11  ;;  %1070 = vst.msk [vmem:[%s1751_s25 + $0x7c] sm:$0xf] %vm1038_vm5, %v1523_v31  ;;  %v1167_v18 = vmul.f32 %v1981_v19, %v1981_v19  ;;  %v1124_v41 = vsel %vm269_vm0, %v1981_v19, 0.0 }
 0x15e   : > { %v1223_v23 = vsel %vm269_vm0, %v1166_v14, 0.0  ;;  %v1168_v24 = vmul.f32 %v1990_v39, %v1990_v39  ;;  %v1126_v58 = vsel %vm269_vm0, %v1990_v39, 0.0  ;;  %v1170_v31 = vmul.f32 %v2014_v5, %v2014_v5 }
 0x15f   : > { %v1105_v34 = vadd.f32 %v1104_v33, %v1103_v29  ;;  %v1204_v35 = vadd.f32 %v1203_v32, %v1202_v30  ;;  %v1225_v29 = vsel %vm269_vm0, %v1167_v18, 0.0  ;;  %v1169_v30 = vmul.f32 %v2006_v61, %v2006_v61 }
 0x160   : > { %v1227_v19 = vsel %vm269_vm0, %v1168_v24, 0.0  ;;  %v1128_v13 = vsel %vm269_vm0, %v2006_v61, 0.0  ;;  %v1171_v42 = vmul.f32 %v2034_v28, %v2034_v28 }
 0x161   : > { %v1107_v43 = vadd.f32 %v1106_v40, %v1105_v34  ;;  %v1206_v44 = vadd.f32 %v1205_v37, %v1204_v35  ;;  %v1130_v34 = vsel %vm269_vm0, %v2014_v5, 0.0  ;;  %v1229_v39 = vsel %vm269_vm0, %v1169_v30, 0.0 }
 0x162   : > { %v1231_v40 = vsel %vm269_vm0, %v1170_v31, 0.0  ;;  %v1233_v61 = vsel %vm269_vm0, %v1171_v42, 0.0 }
 0x163   : > { %v1109_v48 = vadd.f32 %v1108_v21, %v1107_v43  ;;  %v1208_v49 = vadd.f32 %v1207_v45, %v1206_v44  ;;  %v1132_v45 = vsel %vm269_vm0, %v2034_v28, 0.0 }
 0x165   : > { %v1210_v52 = vadd.f32 %v1209_v50, %v1208_v49  ;;  %v1111_v53 = vadd.f32 %v1110_v36, %v1109_v48 }
 0x167   : > { %v1113_v56 = vadd.f32 %v1112_v46, %v1111_v53  ;;  %v1212_v57 = vadd.f32 %v1211_v54, %v1210_v52 }
 0x169   : > { %v1115_v0 = vadd.f32 %v1114_v62, %v1113_v56  ;;  %v1214_v1 = vadd.f32 %v1213_v59, %v1212_v57  ;;  %v1241_v59 = vld [vmem:[#allocation3] sm:$0x3] }
 0x16b   : > { %v1117_v4 = vadd.f32 %v1116_v26, %v1115_v0  ;;  %v1216_v6 = vadd.f32 %v1215_v2, %v1214_v1 }
 0x16d   : > { %v1119_v9 = vadd.f32 %v1118_v38, %v1117_v4  ;;  %v1218_v10 = vadd.f32 %v1217_v7, %v1216_v6 }
 0x16f   : > { %v1220_v15 = vadd.f32 %v1219_v12, %v1218_v10  ;;  %v1121_v16 = vadd.f32 %v1120_v63, %v1119_v9 }
 0x171   : > { %v1222_v20 = vadd.f32 %v1221_v17, %v1220_v15  ;;  %v1123_v11 = vadd.f32 %v1122_v22, %v1121_v16 }
 0x173   : > { %v1224_v25 = vadd.f32 %v1223_v23, %v1222_v20  ;;  %v1125_v27 = vadd.f32 %v1124_v41, %v1123_v11 }
 0x175   : > { %v1226_v32 = vadd.f32 %v1225_v29, %v1224_v25  ;;  %v1127_v33 = vadd.f32 %v1126_v58, %v1125_v27 }
 0x177   : > { %v1228_v35 = vadd.f32 %v1227_v19, %v1226_v32  ;;  %v1129_v37 = vadd.f32 %v1128_v13, %v1127_v33 }
 0x179   : > { %v1230_v43 = vadd.f32 %v1229_v39, %v1228_v35  ;;  %v1131_v44 = vadd.f32 %v1130_v34, %v1129_v37 }
 0x17b   : > { %v1232_v21 = vadd.f32 %v1231_v40, %v1230_v43  ;;  %v1133_v47 = vadd.f32 %v1132_v45, %v1131_v44 }
 0x17d   : > { %v1134_v48 = vrot.slane %v1133_v47, 4  ;;  %v1234_v5 = vadd.f32 %v1233_v61, %v1232_v21 }
 0x17f   : > { %v1135_v49 = vadd.f32 %v1134_v48, %v1133_v47  ;;  %v1235_v50 = vrot.slane %v1234_v5, 4 }
 0x181   : > { %v1136_v36 = vrot.slane %v1135_v49, 2  ;;  %v1236_v51 = vadd.f32 %v1235_v50, %v1234_v5 }
 0x183   : > { %v1137_v52 = vadd.f32 %v1136_v36, %v1135_v49  ;;  %v1237_v53 = vrot.slane %v1236_v51, 2 }
 0x185   : > { %v1138_v54 = vrot.slane %v1137_v52, 1  ;;  %v1238_v46 = vadd.f32 %v1237_v53, %v1236_v51 }
 0x187   : > { %v1239_v55 = vrot.slane %v1238_v46, 1  ;;  %v1139_v56 = vadd.f32 %v1138_v54, %v1137_v52 }
 0x188   : > { %1250 = sbr.rel (!%p1246_p6) target bundleno = 407 (0x197), region = 44 }
 0x189   : > { %v1240_v57 = vadd.f32 %v1239_v55, %v1238_v46 }
 0x18b   : > { %v1242_v28 = vsel %vm642_vm3, %v1139_v56, %v1240_v57 }
 0x18c   : > { %v1243_v62 = vadd.f32 %v1242_v28, %v1241_v59 }
 0x18e   : > { %1245 = vst.msk [vmem:[#allocation3] sm:$0x3] %vm1244_vm6, %v1243_v62 }
 0x195   : > { %v1251_v60 = vld [vmem:[#allocation3] sm:$0x3] }
 0x196   : > { %1253 = vst.msk [vmem:[%s2132_s3] sm:$0x3] %vm1244_vm6, %v1251_v60 }
 0x197 PF: > { %s14_s14 = sadd.s32 1, %s1653_s14   ;;  %s2134_s12 = smov %s1649_s13 }
 0x198   : > { %p11_p7 = scmp.ge.s32.totalorder %s14_s14, 10   ;;  %s2135_s13 = smov %s2137_s15 }
 0x19a   :  { %13 = sbr.rel (!%p11_p7) target bundleno = 2 (0x2), region = 89 }

// kernel: stem_forward.3
= control target key start
LH: loop header
LB: loop body
LE: loop exit
PB: predicated region body
PF: predicated region fallthrough
CT: control target
= control target key end

     0   :  { %s1963_s0 = inlined_call_operand.vmem [shape: f32[512,64], index: 0, kind: input, shape index: {}]   ;;  %s1964_s1 = inlined_call_operand.vmem [shape: f32[512,64], index: 1, kind: input, shape index: {}]   ;;  %s1965_s2 = inlined_call_operand.vmem [shape: f32[512,64], index: 2, kind: input, shape index: {}]   ;;  %s1966_s3 = inlined_call_operand.vmem [shape: f32[512,64], index: 3, kind: input, shape index: {}]   ;;  %s1967_s4 = inlined_call_operand.vmem [shape: f32[512,64], index: 4, kind: input, shape index: {}]   ;;  %s1968_s5 = inlined_call_operand.vmem [shape: f32[512,64], index: 5, kind: input, shape index: {}]   ;;  %s1969_s6 = inlined_call_operand.vmem [shape: f32[512,64], index: 6, kind: input, shape index: {}]   ;;  %s1970_s7 = inlined_call_operand.vmem [shape: f32[512,64], index: 7, kind: input, shape index: {}]   ;;  %s1971_s8 = inlined_call_operand.vmem [shape: f32[512,64], index: 8, kind: input, shape index: {}]   ;;  %s1972_s9 = inlined_call_operand.hbm [shape: f32[512,64], index: 9, kind: output, shape index: {}]  }
   0x1   :  { %1973 = sst [smem:[#allocation5_spill]] %s1963_s0 }
   0x2   :  { %1974 = sst [smem:[#allocation6_spill]] %s1964_s1 }
   0x3   :  { %1975 = sst [smem:[#allocation7_spill]] %s1965_s2 }
   0x4   :  { %14 = vsyncpa [#allocation3], 0 }
   0x5   :  { %16 = vsyncpa [#allocation3 + $0x1], 0  ;;  %s1446_s30 = smov 0   ;;  %s1448_s10 = smov 0  }
   0x6   :  { %s1450_s11 = smov 0   ;;  %s1452_s12 = smov 0  }
   0x7 LB: > { %s1467_s13 = sadd.s32 4294967295, %s1391_s12   ;;  %s1259_s14 = sadd.s32 4294967294, %s1391_s12   ;;  %s1391_s12 = sphi %s1452_s12, %s1984_s12   ;;  %s1387_s11 = sphi %s1450_s11, %s1983_s11   ;;  %s1383_s10 = sphi %s1448_s10, %s1982_s10   ;;  %s1379_s30 = sphi %s1446_s30, %s1981_s30  }
   0x8   : > { %s1471_s15 = sadd.s32 1, %s1391_s12   ;;  %s263_s16 = sadd.s32 1, %s1387_s11 }
   0x9   : > { %s260_s17 = ssub.s32 %s1391_s12, %s1471_s15  ;;  %p273_p0 = scmp.ne.s32.totalorder %s1387_s11, %s1383_s10 }
   0xa   : > { %p261_p1 = scmp.eq.s32.totalorder %s260_s17, 0  ;;  %p274_p2 = scmp.eq.s32.totalorder %s1467_s13, 1 }
   0xb   : > { %p279_p3 = scmp.ne.s32.totalorder %s1383_s10, %s1379_s30  ;;  %p280_p4 = scmp.eq.s32.totalorder %s1259_s14, 1 }
   0xc   : > { %s1482_s18 = scalar_select %p261_p1, %s1387_s11, %s263_s16  }
   0xd   : > { %p1484_p5 = por %p274_p2, %p273_p0  ;;  %p1488_p6 = por %p280_p4, %p279_p3 }
   0xe   : > { %p1262_p7 = scmp.ge.s32.totalorder %s1391_s12, 1  ;;  %p379_p8 = scmp.lt.s32.totalorder %s1391_s12, 3 }
  0x10   : > { %p380_p9 = pnand %p1262_p7, %p379_p8 }
  0x11   : > { %s1264_s21 = sshll.u32 (!%p380_p9), %s1467_s13, 5  ;;  %s1978_s0 = sld [smem:[#allocation5_spill]] (!%p380_p9)  ;;  %vm1054_vm0 = vcmask (!%p380_p9), 523264  }
  0x12   : > { %383 = sbr.rel (%p380_p9) target bundleno = 151 (0x97), region = 56  ;;  %p456_p10 = scmp.lt.s32.totalorder (!%p380_p9), %s1264_s21, 63 }
  0x13   : > { %s1979_s1 = sld [smem:[#allocation6_spill]] (!%p380_p9)  ;;  %s1980_s2 = sld [smem:[#allocation7_spill]] (!%p380_p9) }
  0x19   : > { %s1986_s21 = smov (!%p456_p10, %s1264_s21), 63 }
  0x1a   : > { %s1495_s22 = sshll.u32 %s1986_s21, 3 }
  0x1b   : > { %s1501_s25 = scalar_lea.vmem %s1978_s0, %s1495_s22  ;;  %s1507_s28 = scalar_lea.vmem %s1979_s1, %s1495_s22 }
  0x1c   : > { %s1513_s16 = scalar_lea.vmem %s1980_s2, %s1495_s22  ;;  %s1519_s23 = scalar_lea.vmem %s1966_s3, %s1495_s22  ;;  %v510_v0 = vld [vmem:[%s1501_s25] sm:$0xff]  ;;  %v511_v2 = vld [vmem:[%s1501_s25 + $0x8] sm:$0xff]  ;;  %v512_v17 = vld [vmem:[%s1501_s25 + $0x10] sm:$0xff] }
  0x1d   : > { %v542_v1 = vld [vmem:[%s1507_s28] sm:$0xff]  ;;  %s1528_s27 = scalar_lea.vmem %s1967_s4, %s1495_s22  ;;  %v543_v5 = vld [vmem:[%s1507_s28 + $0x8] sm:$0xff]  ;;  %s1536_s17 = scalar_lea.vmem %s1968_s5, %s1495_s22  ;;  %v544_v18 = vld [vmem:[%s1507_s28 + $0x10] sm:$0xff] }
  0x1e   : > { %v574_v3 = vmax.f32 %v510_v0, %v542_v1  ;;  %v606_v4 = vld [vmem:[%s1513_s16] sm:$0xff]  ;;  %v575_v7 = vmax.f32 %v511_v2, %v543_v5  ;;  %v607_v8 = vld [vmem:[%s1513_s16 + $0x8] sm:$0xff]  ;;  %s1546_s26 = scalar_lea.vmem %s1969_s6, %s1495_s22  ;;  %v608_v19 = vld [vmem:[%s1513_s16 + $0x10] sm:$0xff]  ;;  %s1557_s0 = scalar_lea.vmem %s1970_s7, %s1495_s22  ;;  %v576_v22 = vmax.f32 %v512_v17, %v544_v18 }
  0x1f   : > { %v670_v6 = vld [vmem:[%s1519_s23] sm:$0xff]  ;;  %v671_v10 = vld [vmem:[%s1519_s23 + $0x8] sm:$0xff]  ;;  %s1563_s1 = scalar_lea.vmem %s1971_s8, %s1495_s22  ;;  %s452_s2 = sand.u32 1, %s1383_s10   ;;  %v672_v26 = vld [vmem:[%s1519_s23 + $0x10] sm:$0xff] }
  0x20   : > { %v638_v9 = vmax.f32 %v574_v3, %v606_v4  ;;  %v734_v11 = vld [vmem:[%s1528_s27] sm:$0xff]  ;;  %v639_v12 = vmax.f32 %v575_v7, %v607_v8  ;;  %v735_v15 = vld [vmem:[%s1528_s27 + $0x8] sm:$0xff]  ;;  %v640_v28 = vmax.f32 %v576_v22, %v608_v19  ;;  %v513_v29 = vld [vmem:[%s1501_s25 + $0x18] sm:$0xff]  ;;  %s1578_s22 = sshll.u32 %s452_s2, 8 }
  0x21   : > { %v798_v14 = vld [vmem:[%s1536_s17] sm:$0xff]  ;;  %v799_v21 = vld [vmem:[%s1536_s17 + $0x8] sm:$0xff]  ;;  %v545_v30 = vld [vmem:[%s1507_s28 + $0x18] sm:$0xff]  ;;  %s1598_s29 = scalar_lea.vmem [#allocation2], %s1578_s22 }
  0x22   : > { %v702_v13 = vmax.f32 %v638_v9, %v670_v6  ;;  %v703_v16 = vmax.f32 %v639_v12, %v671_v10  ;;  %v862_v23 = vld [vmem:[%s1546_s26] sm:$0xff]  ;;  %v863_v25 = vld [vmem:[%s1546_s26 + $0x8] sm:$0xff]  ;;  %v609_v31 = vld [vmem:[%s1513_s16 + $0x18] sm:$0xff]  ;;  %v577_v36 = vmax.f32 %v513_v29, %v545_v30  ;;  %v704_v39 = vmax.f32 %v640_v28, %v672_v26 }
  0x23   : > { %v926_v32 = vld [vmem:[%s1557_s0] sm:$0xff]  ;;  %v736_v35 = vld [vmem:[%s1528_s27 + $0x10] sm:$0xff]  ;;  %v927_v38 = vld [vmem:[%s1557_s0 + $0x8] sm:$0xff] }
  0x24   : > { %v766_v20 = vmax.f32 %v702_v13, %v734_v11  ;;  %v767_v24 = vmax.f32 %v703_v16, %v735_v15  ;;  %v990_v33 = vld [vmem:[%s1563_s1] sm:$0xff]  ;;  %v800_v40 = vld [vmem:[%s1536_s17 + $0x10] sm:$0xff]  ;;  %v673_v41 = vld [vmem:[%s1519_s23 + $0x18] sm:$0xff]  ;;  %v641_v43 = vmax.f32 %v577_v36, %v609_v31  ;;  %v768_v49 = vmax.f32 %v704_v39, %v736_v35 }
  0x25   : > { %v514_v44 = vld [vmem:[%s1501_s25 + $0x20] sm:$0xff]  ;;  %v991_v48 = vld [vmem:[%s1563_s1 + $0x8] sm:$0xff]  ;;  %v737_v50 = vld [vmem:[%s1528_s27 + $0x18] sm:$0xff] }
  0x26   : > { %v830_v27 = vmax.f32 %v766_v20, %v798_v14  ;;  %v831_v34 = vmax.f32 %v767_v24, %v799_v21  ;;  %v546_v45 = vld [vmem:[%s1507_s28 + $0x20] sm:$0xff]  ;;  %v864_v53 = vld [vmem:[%s1546_s26 + $0x10] sm:$0xff]  ;;  %v705_v54 = vmax.f32 %v641_v43, %v673_v41  ;;  %v801_v55 = vld [vmem:[%s1536_s17 + $0x18] sm:$0xff]  ;;  %v832_v58 = vmax.f32 %v768_v49, %v800_v40 }
  0x27   : > { %v610_v46 = vld [vmem:[%s1513_s16 + $0x20] sm:$0xff]  ;;  %v578_v51 = vmax.f32 %v514_v44, %v546_v45  ;;  %v515_v60 = vld [vmem:[%s1501_s25 + $0x28] sm:$0xff]  ;;  %v928_v0 = vld [vmem:[%s1557_s0 + $0x10] sm:$0xff] }
  0x28   : > { %v894_v37 = vmax.f32 %v830_v27, %v862_v23  ;;  %v895_v42 = vmax.f32 %v831_v34, %v863_v25  ;;  %v674_v56 = vld [vmem:[%s1519_s23 + $0x20] sm:$0xff]  ;;  %v547_v61 = vld [vmem:[%s1507_s28 + $0x28] sm:$0xff]  ;;  %v992_v1 = vld [vmem:[%s1563_s1 + $0x10] sm:$0xff]  ;;  %v769_v2 = vmax.f32 %v705_v54, %v737_v50  ;;  %v896_v5 = vmax.f32 %v832_v58, %v864_v53 }
  0x29   : > { %v642_v59 = vmax.f32 %v578_v51, %v610_v46  ;;  %v611_v62 = vld [vmem:[%s1513_s16 + $0x28] sm:$0xff]  ;;  %v738_v3 = vld [vmem:[%s1528_s27 + $0x20] sm:$0xff]  ;;  %v579_v4 = vmax.f32 %v515_v60, %v547_v61  ;;  %v865_v6 = vld [vmem:[%s1546_s26 + $0x18] sm:$0xff] }
  0x2a   : > { %v958_v47 = vmax.f32 %v894_v37, %v926_v32  ;;  %v959_v52 = vmax.f32 %v895_v42, %v927_v38  ;;  %v802_v8 = vld [vmem:[%s1536_s17 + $0x20] sm:$0xff]  ;;  %v675_v9 = vld [vmem:[%s1519_s23 + $0x28] sm:$0xff]  ;;  %v833_v10 = vmax.f32 %v769_v2, %v801_v55  ;;  %v516_v12 = vld [vmem:[%s1501_s25 + $0x30] sm:$0xff]  ;;  %v960_v15 = vmax.f32 %v896_v5, %v928_v0 }
  0x2b   : > { %v706_v7 = vmax.f32 %v642_v59, %v674_v56  ;;  %v643_v11 = vmax.f32 %v579_v4, %v611_v62  ;;  %v548_v13 = vld [vmem:[%s1507_s28 + $0x30] sm:$0xff]  ;;  %v929_v16 = vld [vmem:[%s1557_s0 + $0x18] sm:$0xff]  ;;  %v739_v19 = vld [vmem:[%s1528_s27 + $0x28] sm:$0xff] }
  0x2c   : > { %v1022_v57 = vmax.f32 %v958_v47, %v990_v33  ;;  %v1023_v63 = vmax.f32 %v959_v52, %v991_v48  ;;  %v612_v14 = vld [vmem:[%s1513_s16 + $0x30] sm:$0xff]  ;;  %v993_v17 = vld [vmem:[%s1563_s1 + $0x18] sm:$0xff]  ;;  %v580_v20 = vmax.f32 %v516_v12, %v548_v13  ;;  %v897_v21 = vmax.f32 %v833_v10, %v865_v6  ;;  %v866_v22 = vld [vmem:[%s1546_s26 + $0x20] sm:$0xff] }
  0x2d   : > { %v770_v18 = vmax.f32 %v706_v7, %v738_v3  ;;  %v707_v23 = vmax.f32 %v643_v11, %v675_v9  ;;  %v803_v24 = vld [vmem:[%s1536_s17 + $0x28] sm:$0xff]  ;;  %v676_v25 = vld [vmem:[%s1519_s23 + $0x30] sm:$0xff]  ;;  %v1024_v26 = vmax.f32 %v960_v15, %v992_v1  ;;  %v517_v29 = vld [vmem:[%s1501_s25 + $0x38] sm:$0xff] }
  0x2e   : > { %1055 = vst.msk [vmem:[%s1598_s29] sm:$0xff] %vm1054_vm0, %v1022_v57  ;;  %1056 = vst.msk [vmem:[%s1598_s29 + $0x8] sm:$0xff] %vm1054_vm0, %v1023_v63  ;;  %v644_v28 = vmax.f32 %v580_v20, %v612_v14  ;;  %v549_v30 = vld [vmem:[%s1507_s28 + $0x38] sm:$0xff]  ;;  %v961_v32 = vmax.f32 %v897_v21, %v929_v16  ;;  %v930_v33 = vld [vmem:[%s1557_s0 + $0x20] sm:$0xff] }
  0x2f   : > { %v834_v27 = vmax.f32 %v770_v18, %v802_v8  ;;  %v613_v31 = vld [vmem:[%s1513_s16 + $0x38] sm:$0xff]  ;;  %v994_v34 = vld [vmem:[%s1563_s1 + $0x20] sm:$0xff]  ;;  %v771_v35 = vmax.f32 %v707_v23, %v739_v19  ;;  %v740_v36 = vld [vmem:[%s1528_s27 + $0x30] sm:$0xff]  ;;  %v581_v37 = vmax.f32 %v517_v29, %v549_v30  ;;  %1057 = vst.msk [vmem:[%s1598_s29 + $0x10] sm:$0xff] %vm1054_vm0, %v1024_v26 }
  0x30   : > { %v867_v39 = vld [vmem:[%s1546_s26 + $0x28] sm:$0xff]  ;;  %v708_v40 = vmax.f32 %v644_v28, %v676_v25  ;;  %v804_v41 = vld [vmem:[%s1536_s17 + $0x30] sm:$0xff]  ;;  %v677_v42 = vld [vmem:[%s1519_s23 + $0x38] sm:$0xff]  ;;  %v1025_v43 = vmax.f32 %v961_v32, %v993_v17 }
  0x31   : > { %v898_v38 = vmax.f32 %v834_v27, %v866_v22  ;;  %v835_v44 = vmax.f32 %v771_v35, %v803_v24  ;;  %v645_v45 = vmax.f32 %v581_v37, %v613_v31  ;;  %v518_v46 = vld [vmem:[%s1501_s25 + $0x40] sm:$0xff]  ;;  %v931_v50 = vld [vmem:[%s1557_s0 + $0x28] sm:$0xff]  ;;  %v741_v53 = vld [vmem:[%s1528_s27 + $0x38] sm:$0xff] }
  0x32   : > { %v550_v47 = vld [vmem:[%s1507_s28 + $0x40] sm:$0xff]  ;;  %v995_v51 = vld [vmem:[%s1563_s1 + $0x28] sm:$0xff]  ;;  %v772_v52 = vmax.f32 %v708_v40, %v740_v36  ;;  %1058 = vst.msk [vmem:[%s1598_s29 + $0x18] sm:$0xff] %vm1054_vm0, %v1025_v43  ;;  %v868_v56 = vld [vmem:[%s1546_s26 + $0x30] sm:$0xff] }
  0x33   : > { %v614_v48 = vld [vmem:[%s1513_s16 + $0x40] sm:$0xff]  ;;  %v962_v49 = vmax.f32 %v898_v38, %v930_v33  ;;  %v582_v54 = vmax.f32 %v518_v46, %v550_v47  ;;  %v899_v55 = vmax.f32 %v835_v44, %v867_v39  ;;  %v709_v57 = vmax.f32 %v645_v45, %v677_v42  ;;  %v805_v58 = vld [vmem:[%s1536_s17 + $0x38] sm:$0xff]  ;;  %v519_v63 = vld [vmem:[%s1501_s25 + $0x48] sm:$0xff] }
  0x34   : > { %v678_v59 = vld [vmem:[%s1519_s23 + $0x40] sm:$0xff]  ;;  %v836_v61 = vmax.f32 %v772_v52, %v804_v41  ;;  %v551_v0 = vld [vmem:[%s1507_s28 + $0x48] sm:$0xff]  ;;  %v932_v3 = vld [vmem:[%s1557_s0 + $0x30] sm:$0xff] }
  0x35   : > { %v1026_v60 = vmax.f32 %v962_v49, %v994_v34  ;;  %v646_v62 = vmax.f32 %v582_v54, %v614_v48  ;;  %v615_v1 = vld [vmem:[%s1513_s16 + $0x48] sm:$0xff]  ;;  %v963_v2 = vmax.f32 %v899_v55, %v931_v50  ;;  %v996_v4 = vld [vmem:[%s1563_s1 + $0x30] sm:$0xff]  ;;  %v773_v5 = vmax.f32 %v709_v57, %v741_v53  ;;  %v742_v6 = vld [vmem:[%s1528_s27 + $0x40] sm:$0xff] }
  0x36   : > { %v583_v7 = vmax.f32 %v519_v63, %v551_v0  ;;  %v900_v8 = vmax.f32 %v836_v61, %v868_v56  ;;  %v869_v9 = vld [vmem:[%s1546_s26 + $0x38] sm:$0xff]  ;;  %v806_v11 = vld [vmem:[%s1536_s17 + $0x40] sm:$0xff]  ;;  %v679_v12 = vld [vmem:[%s1519_s23 + $0x48] sm:$0xff] }
  0x37   : > { %1059 = vst.msk [vmem:[%s1598_s29 + $0x20] sm:$0xff] %vm1054_vm0, %v1026_v60  ;;  %v710_v10 = vmax.f32 %v646_v62, %v678_v59  ;;  %v1027_v13 = vmax.f32 %v963_v2, %v995_v51  ;;  %v837_v14 = vmax.f32 %v773_v5, %v805_v58  ;;  %v520_v16 = vld [vmem:[%s1501_s25 + $0x50] sm:$0xff]  ;;  %v933_v20 = vld [vmem:[%s1557_s0 + $0x38] sm:$0xff]  ;;  %v743_v23 = vld [vmem:[%s1528_s27 + $0x48] sm:$0xff] }
  0x38   : > { %v647_v15 = vmax.f32 %v583_v7, %v615_v1  ;;  %v552_v17 = vld [vmem:[%s1507_s28 + $0x50] sm:$0xff]  ;;  %v964_v19 = vmax.f32 %v900_v8, %v932_v3  ;;  %v997_v21 = vld [vmem:[%s1563_s1 + $0x38] sm:$0xff]  ;;  %v870_v26 = vld [vmem:[%s1546_s26 + $0x40] sm:$0xff] }
  0x39   : > { %v616_v18 = vld [vmem:[%s1513_s16 + $0x50] sm:$0xff]  ;;  %v774_v22 = vmax.f32 %v710_v10, %v742_v6  ;;  %v584_v24 = vmax.f32 %v520_v16, %v552_v17  ;;  %1060 = vst.msk [vmem:[%s1598_s29 + $0x28] sm:$0xff] %vm1054_vm0, %v1027_v13  ;;  %v901_v25 = vmax.f32 %v837_v14, %v869_v9  ;;  %v807_v28 = vld [vmem:[%s1536_s17 + $0x48] sm:$0xff]  ;;  %v521_v33 = vld [vmem:[%s1501_s25 + $0x58] sm:$0xff] }
  0x3a   : > { %v711_v27 = vmax.f32 %v647_v15, %v679_v12  ;;  %v680_v29 = vld [vmem:[%s1519_s23 + $0x50] sm:$0xff]  ;;  %v1028_v30 = vmax.f32 %v964_v19, %v996_v4  ;;  %v553_v34 = vld [vmem:[%s1507_s28 + $0x58] sm:$0xff]  ;;  %v934_v37 = vld [vmem:[%s1557_s0 + $0x40] sm:$0xff] }
  0x3b   : > { %v838_v31 = vmax.f32 %v774_v22, %v806_v11  ;;  %v648_v32 = vmax.f32 %v584_v24, %v616_v18  ;;  %v617_v35 = vld [vmem:[%s1513_s16 + $0x58] sm:$0xff]  ;;  %v965_v36 = vmax.f32 %v901_v25, %v933_v20  ;;  %v998_v38 = vld [vmem:[%s1563_s1 + $0x40] sm:$0xff]  ;;  %v744_v40 = vld [vmem:[%s1528_s27 + $0x50] sm:$0xff]  ;;  %v585_v41 = vmax.f32 %v521_v33, %v553_v34 }
  0x3c   : > { %v775_v39 = vmax.f32 %v711_v27, %v743_v23  ;;  %1061 = vst.msk [vmem:[%s1598_s29 + $0x30] sm:$0xff] %vm1054_vm0, %v1028_v30  ;;  %v871_v43 = vld [vmem:[%s1546_s26 + $0x48] sm:$0xff]  ;;  %v808_v45 = vld [vmem:[%s1536_s17 + $0x50] sm:$0xff]  ;;  %v681_v46 = vld [vmem:[%s1519_s23 + $0x58] sm:$0xff] }
  0x3d   : > { %v902_v42 = vmax.f32 %v838_v31, %v870_v26  ;;  %v712_v44 = vmax.f32 %v648_v32, %v680_v29  ;;  %v1029_v47 = vmax.f32 %v965_v36, %v997_v21  ;;  %v649_v49 = vmax.f32 %v585_v41, %v617_v35  ;;  %v522_v50 = vld [vmem:[%s1501_s25 + $0x60] sm:$0xff]  ;;  %v935_v54 = vld [vmem:[%s1557_s0 + $0x48] sm:$0xff]  ;;  %v745_v57 = vld [vmem:[%s1528_s27 + $0x58] sm:$0xff] }
  0x3e   : > { %v839_v48 = vmax.f32 %v775_v39, %v807_v28  ;;  %v554_v51 = vld [vmem:[%s1507_s28 + $0x60] sm:$0xff]  ;;  %v999_v55 = vld [vmem:[%s1563_s1 + $0x48] sm:$0xff]  ;;  %v872_v60 = vld [vmem:[%s1546_s26 + $0x50] sm:$0xff] }
  0x3f   : > { %v618_v52 = vld [vmem:[%s1513_s16 + $0x60] sm:$0xff]  ;;  %v966_v53 = vmax.f32 %v902_v42, %v934_v37  ;;  %v776_v56 = vmax.f32 %v712_v44, %v744_v40  ;;  %v586_v58 = vmax.f32 %v522_v50, %v554_v51  ;;  %1062 = vst.msk [vmem:[%s1598_s29 + $0x38] sm:$0xff] %vm1054_vm0, %v1029_v47  ;;  %v713_v61 = vmax.f32 %v649_v49, %v681_v46  ;;  %v809_v62 = vld [vmem:[%s1536_s17 + $0x58] sm:$0xff]  ;;  %v523_v3 = vld [vmem:[%s1501_s25 + $0x68] sm:$0xff] }
  0x40   : > { %v903_v59 = vmax.f32 %v839_v48, %v871_v43  ;;  %v682_v63 = vld [vmem:[%s1519_s23 + $0x60] sm:$0xff]  ;;  %v555_v4 = vld [vmem:[%s1507_s28 + $0x68] sm:$0xff]  ;;  %v936_v7 = vld [vmem:[%s1557_s0 + $0x50] sm:$0xff] }
  0x41   : > { %v1030_v0 = vmax.f32 %v966_v53, %v998_v38  ;;  %v840_v1 = vmax.f32 %v776_v56, %v808_v45  ;;  %v650_v2 = vmax.f32 %v586_v58, %v618_v52  ;;  %v619_v5 = vld [vmem:[%s1513_s16 + $0x68] sm:$0xff]  ;;  %v1000_v8 = vld [vmem:[%s1563_s1 + $0x50] sm:$0xff]  ;;  %v777_v9 = vmax.f32 %v713_v61, %v745_v57  ;;  %v746_v10 = vld [vmem:[%s1528_s27 + $0x60] sm:$0xff] }
  0x42   : > { %v967_v6 = vmax.f32 %v903_v59, %v935_v54  ;;  %v587_v11 = vmax.f32 %v523_v3, %v555_v4  ;;  %v873_v13 = vld [vmem:[%s1546_s26 + $0x58] sm:$0xff]  ;;  %v810_v15 = vld [vmem:[%s1536_s17 + $0x60] sm:$0xff]  ;;  %v683_v16 = vld [vmem:[%s1519_s23 + $0x68] sm:$0xff] }
  0x43   : > { %1063 = vst.msk [vmem:[%s1598_s29 + $0x40] sm:$0xff] %vm1054_vm0, %v1030_v0  ;;  %v904_v12 = vmax.f32 %v840_v1, %v872_v60  ;;  %v714_v14 = vmax.f32 %v650_v2, %v682_v63  ;;  %v841_v18 = vmax.f32 %v777_v9, %v809_v62  ;;  %v524_v20 = vld [vmem:[%s1501_s25 + $0x70] sm:$0xff]  ;;  %v937_v24 = vld [vmem:[%s1557_s0 + $0x58] sm:$0xff]  ;;  %v747_v27 = vld [vmem:[%s1528_s27 + $0x68] sm:$0xff] }
  0x44   : > { %v1031_v17 = vmax.f32 %v967_v6, %v999_v55  ;;  %v651_v19 = vmax.f32 %v587_v11, %v619_v5  ;;  %v556_v21 = vld [vmem:[%s1507_s28 + $0x70] sm:$0xff]  ;;  %v1001_v25 = vld [vmem:[%s1563_s1 + $0x58] sm:$0xff]  ;;  %v874_v30 = vld [vmem:[%s1546_s26 + $0x60] sm:$0xff] }
  0x45   : > { %v620_v22 = vld [vmem:[%s1513_s16 + $0x70] sm:$0xff]  ;;  %v968_v23 = vmax.f32 %v904_v12, %v936_v7  ;;  %v778_v26 = vmax.f32 %v714_v14, %v746_v10  ;;  %v588_v28 = vmax.f32 %v524_v20, %v556_v21  ;;  %v905_v29 = vmax.f32 %v841_v18, %v873_v13  ;;  %v811_v32 = vld [vmem:[%s1536_s17 + $0x68] sm:$0xff]  ;;  %v525_v37 = vld [vmem:[%s1501_s25 + $0x78] sm:$0xff] }
  0x46   : > { %1064 = vst.msk [vmem:[%s1598_s29 + $0x48] sm:$0xff] %vm1054_vm0, %v1031_v17  ;;  %v715_v31 = vmax.f32 %v651_v19, %v683_v16  ;;  %v684_v33 = vld [vmem:[%s1519_s23 + $0x70] sm:$0xff]  ;;  %v557_v38 = vld [vmem:[%s1507_s28 + $0x78] sm:$0xff]  ;;  %v938_v41 = vld [vmem:[%s1557_s0 + $0x60] sm:$0xff] }
  0x47   : > { %v1032_v34 = vmax.f32 %v968_v23, %v1000_v8  ;;  %v842_v35 = vmax.f32 %v778_v26, %v810_v15  ;;  %v652_v36 = vmax.f32 %v588_v28, %v620_v22  ;;  %v621_v39 = vld [vmem:[%s1513_s16 + $0x78] sm:$0xff]  ;;  %v969_v40 = vmax.f32 %v905_v29, %v937_v24  ;;  %v1002_v42 = vld [vmem:[%s1563_s1 + $0x60] sm:$0xff]  ;;  %v748_v44 = vld [vmem:[%s1528_s27 + $0x70] sm:$0xff] }
  0x48   : > { %v779_v43 = vmax.f32 %v715_v31, %v747_v27  ;;  %v589_v45 = vmax.f32 %v525_v37, %v557_v38  ;;  %v875_v47 = vld [vmem:[%s1546_s26 + $0x68] sm:$0xff]  ;;  %v812_v49 = vld [vmem:[%s1536_s17 + $0x70] sm:$0xff]  ;;  %v685_v50 = vld [vmem:[%s1519_s23 + $0x78] sm:$0xff] }
  0x49   : > { %1065 = vst.msk [vmem:[%s1598_s29 + $0x50] sm:$0xff] %vm1054_vm0, %v1032_v34  ;;  %v906_v46 = vmax.f32 %v842_v35, %v874_v30  ;;  %v716_v48 = vmax.f32 %v652_v36, %v684_v33  ;;  %v1033_v51 = vmax.f32 %v969_v40, %v1001_v25  ;;  %v526_v54 = vld [vmem:[%s1501_s25 + $0x80] sm:$0xff]  ;;  %v939_v58 = vld [vmem:[%s1557_s0 + $0x68] sm:$0xff]  ;;  %v749_v61 = vld [vmem:[%s1528_s27 + $0x78] sm:$0xff] }
  0x4a   : > { %v843_v52 = vmax.f32 %v779_v43, %v811_v32  ;;  %v653_v53 = vmax.f32 %v589_v45, %v621_v39  ;;  %v558_v55 = vld [vmem:[%s1507_s28 + $0x80] sm:$0xff]  ;;  %v1003_v59 = vld [vmem:[%s1563_s1 + $0x68] sm:$0xff]  ;;  %v876_v0 = vld [vmem:[%s1546_s26 + $0x70] sm:$0xff] }
  0x4b   : > { %v622_v56 = vld [vmem:[%s1513_s16 + $0x80] sm:$0xff]  ;;  %v970_v57 = vmax.f32 %v906_v46, %v938_v41  ;;  %v780_v60 = vmax.f32 %v716_v48, %v748_v44  ;;  %v590_v62 = vmax.f32 %v526_v54, %v558_v55  ;;  %1066 = vst.msk [vmem:[%s1598_s29 + $0x58] sm:$0xff] %vm1054_vm0, %v1033_v51  ;;  %v813_v2 = vld [vmem:[%s1536_s17 + $0x78] sm:$0xff]  ;;  %v527_v7 = vld [vmem:[%s1501_s25 + $0x88] sm:$0xff] }
  0x4c   : > { %v907_v63 = vmax.f32 %v843_v52, %v875_v47  ;;  %v717_v1 = vmax.f32 %v653_v53, %v685_v50  ;;  %v686_v3 = vld [vmem:[%s1519_s23 + $0x80] sm:$0xff]  ;;  %v559_v8 = vld [vmem:[%s1507_s28 + $0x88] sm:$0xff]  ;;  %v940_v11 = vld [vmem:[%s1557_s0 + $0x70] sm:$0xff] }
  0x4d   : > { %v1034_v4 = vmax.f32 %v970_v57, %v1002_v42  ;;  %v844_v5 = vmax.f32 %v780_v60, %v812_v49  ;;  %v654_v6 = vmax.f32 %v590_v62, %v622_v56  ;;  %v623_v9 = vld [vmem:[%s1513_s16 + $0x88] sm:$0xff]  ;;  %v1004_v12 = vld [vmem:[%s1563_s1 + $0x70] sm:$0xff]  ;;  %v750_v14 = vld [vmem:[%s1528_s27 + $0x80] sm:$0xff]  ;;  %v591_v15 = vmax.f32 %v527_v7, %v559_v8 }
  0x4e   : > { %v971_v10 = vmax.f32 %v907_v63, %v939_v58  ;;  %v781_v13 = vmax.f32 %v717_v1, %v749_v61  ;;  %v877_v17 = vld [vmem:[%s1546_s26 + $0x78] sm:$0xff]  ;;  %v814_v19 = vld [vmem:[%s1536_s17 + $0x80] sm:$0xff]  ;;  %v687_v20 = vld [vmem:[%s1519_s23 + $0x88] sm:$0xff] }
  0x4f   : > { %1067 = vst.msk [vmem:[%s1598_s29 + $0x60] sm:$0xff] %vm1054_vm0, %v1034_v4  ;;  %v908_v16 = vmax.f32 %v844_v5, %v876_v0  ;;  %v718_v18 = vmax.f32 %v654_v6, %v686_v3  ;;  %v655_v23 = vmax.f32 %v591_v15, %v623_v9  ;;  %v528_v24 = vld [vmem:[%s1501_s25 + $0x90] sm:$0xff]  ;;  %v941_v28 = vld [vmem:[%s1557_s0 + $0x78] sm:$0xff]  ;;  %v751_v31 = vld [vmem:[%s1528_s27 + $0x88] sm:$0xff] }
  0x50   : > { %v1035_v21 = vmax.f32 %v971_v10, %v1003_v59  ;;  %v845_v22 = vmax.f32 %v781_v13, %v813_v2  ;;  %v560_v25 = vld [vmem:[%s1507_s28 + $0x90] sm:$0xff]  ;;  %v1005_v29 = vld [vmem:[%s1563_s1 + $0x78] sm:$0xff]  ;;  %v878_v34 = vld [vmem:[%s1546_s26 + $0x80] sm:$0xff] }
  0x51   : > { %v624_v26 = vld [vmem:[%s1513_s16 + $0x90] sm:$0xff]  ;;  %v972_v27 = vmax.f32 %v908_v16, %v940_v11  ;;  %v782_v30 = vmax.f32 %v718_v18, %v750_v14  ;;  %v592_v32 = vmax.f32 %v528_v24, %v560_v25  ;;  %v719_v35 = vmax.f32 %v655_v23, %v687_v20  ;;  %v815_v36 = vld [vmem:[%s1536_s17 + $0x88] sm:$0xff]  ;;  %v529_v41 = vld [vmem:[%s1501_s25 + $0x98] sm:$0xff] }
  0x52   : > { %1068 = vst.msk [vmem:[%s1598_s29 + $0x68] sm:$0xff] %vm1054_vm0, %v1035_v21  ;;  %v909_v33 = vmax.f32 %v845_v22, %v877_v17  ;;  %v688_v37 = vld [vmem:[%s1519_s23 + $0x90] sm:$0xff]  ;;  %v561_v42 = vld [vmem:[%s1507_s28 + $0x98] sm:$0xff]  ;;  %v942_v45 = vld [vmem:[%s1557_s0 + $0x80] sm:$0xff] }
  0x53   : > { %v1036_v38 = vmax.f32 %v972_v27, %v1004_v12  ;;  %v846_v39 = vmax.f32 %v782_v30, %v814_v19  ;;  %v656_v40 = vmax.f32 %v592_v32, %v624_v26  ;;  %v625_v43 = vld [vmem:[%s1513_s16 + $0x98] sm:$0xff]  ;;  %v1006_v46 = vld [vmem:[%s1563_s1 + $0x80] sm:$0xff]  ;;  %v783_v47 = vmax.f32 %v719_v35, %v751_v31  ;;  %v752_v48 = vld [vmem:[%s1528_s27 + $0x90] sm:$0xff] }
  0x54   : > { %v973_v44 = vmax.f32 %v909_v33, %v941_v28  ;;  %v593_v49 = vmax.f32 %v529_v41, %v561_v42  ;;  %v879_v51 = vld [vmem:[%s1546_s26 + $0x88] sm:$0xff]  ;;  %v816_v53 = vld [vmem:[%s1536_s17 + $0x90] sm:$0xff]  ;;  %v689_v54 = vld [vmem:[%s1519_s23 + $0x98] sm:$0xff] }
  0x55   : > { %1069 = vst.msk [vmem:[%s1598_s29 + $0x70] sm:$0xff] %vm1054_vm0, %v1036_v38  ;;  %v910_v50 = vmax.f32 %v846_v39, %v878_v34  ;;  %v720_v52 = vmax.f32 %v656_v40, %v688_v37  ;;  %v847_v56 = vmax.f32 %v783_v47, %v815_v36  ;;  %v530_v58 = vld [vmem:[%s1501_s25 + $0xa0] sm:$0xff]  ;;  %v943_v62 = vld [vmem:[%s1557_s0 + $0x88] sm:$0xff]  ;;  %v753_v1 = vld [vmem:[%s1528_s27 + $0x98] sm:$0xff] }
  0x56   : > { %v1037_v55 = vmax.f32 %v973_v44, %v1005_v29  ;;  %v657_v57 = vmax.f32 %v593_v49, %v625_v43  ;;  %v562_v59 = vld [vmem:[%s1507_s28 + $0xa0] sm:$0xff]  ;;  %v1007_v63 = vld [vmem:[%s1563_s1 + $0x88] sm:$0xff]  ;;  %v880_v4 = vld [vmem:[%s1546_s26 + $0x90] sm:$0xff] }
  0x57   : > { %v626_v60 = vld [vmem:[%s1513_s16 + $0xa0] sm:$0xff]  ;;  %v974_v61 = vmax.f32 %v910_v50, %v942_v45  ;;  %v784_v0 = vmax.f32 %v720_v52, %v752_v48  ;;  %v594_v2 = vmax.f32 %v530_v58, %v562_v59  ;;  %v911_v3 = vmax.f32 %v847_v56, %v879_v51  ;;  %v817_v6 = vld [vmem:[%s1536_s17 + $0x98] sm:$0xff]  ;;  %v531_v11 = vld [vmem:[%s1501_s25 + $0xa8] sm:$0xff] }
  0x58   : > { %1070 = vst.msk [vmem:[%s1598_s29 + $0x78] sm:$0xff] %vm1054_vm0, %v1037_v55  ;;  %v721_v5 = vmax.f32 %v657_v57, %v689_v54  ;;  %v690_v7 = vld [vmem:[%s1519_s23 + $0xa0] sm:$0xff]  ;;  %v563_v12 = vld [vmem:[%s1507_s28 + $0xa8] sm:$0xff]  ;;  %v944_v15 = vld [vmem:[%s1557_s0 + $0x90] sm:$0xff] }
  0x59   : > { %v1038_v8 = vmax.f32 %v974_v61, %v1006_v46  ;;  %v848_v9 = vmax.f32 %v784_v0, %v816_v53  ;;  %v658_v10 = vmax.f32 %v594_v2, %v626_v60  ;;  %v627_v13 = vld [vmem:[%s1513_s16 + $0xa8] sm:$0xff]  ;;  %v975_v14 = vmax.f32 %v911_v3, %v943_v62  ;;  %v1008_v16 = vld [vmem:[%s1563_s1 + $0x90] sm:$0xff]  ;;  %v754_v18 = vld [vmem:[%s1528_s27 + $0xa0] sm:$0xff] }
  0x5a   : > { %v785_v17 = vmax.f32 %v721_v5, %v753_v1  ;;  %v595_v19 = vmax.f32 %v531_v11, %v563_v12  ;;  %v881_v21 = vld [vmem:[%s1546_s26 + $0x98] sm:$0xff]  ;;  %v818_v23 = vld [vmem:[%s1536_s17 + $0xa0] sm:$0xff]  ;;  %v691_v24 = vld [vmem:[%s1519_s23 + $0xa8] sm:$0xff] }
  0x5b   : > { %1071 = vst.msk [vmem:[%s1598_s29 + $0x80] sm:$0xff] %vm1054_vm0, %v1038_v8  ;;  %v912_v20 = vmax.f32 %v848_v9, %v880_v4  ;;  %v722_v22 = vmax.f32 %v658_v10, %v690_v7  ;;  %v1039_v25 = vmax.f32 %v975_v14, %v1007_v63  ;;  %v532_v28 = vld [vmem:[%s1501_s25 + $0xb0] sm:$0xff]  ;;  %v945_v32 = vld [vmem:[%s1557_s0 + $0x98] sm:$0xff]  ;;  %v755_v35 = vld [vmem:[%s1528_s27 + $0xa8] sm:$0xff] }
  0x5c   : > { %v849_v26 = vmax.f32 %v785_v17, %v817_v6  ;;  %v659_v27 = vmax.f32 %v595_v19, %v627_v13  ;;  %v564_v29 = vld [vmem:[%s1507_s28 + $0xb0] sm:$0xff]  ;;  %v1009_v33 = vld [vmem:[%s1563_s1 + $0x98] sm:$0xff]  ;;  %v882_v38 = vld [vmem:[%s1546_s26 + $0xa0] sm:$0xff] }
  0x5d   : > { %v628_v30 = vld [vmem:[%s1513_s16 + $0xb0] sm:$0xff]  ;;  %v976_v31 = vmax.f32 %v912_v20, %v944_v15  ;;  %v786_v34 = vmax.f32 %v722_v22, %v754_v18  ;;  %v596_v36 = vmax.f32 %v532_v28, %v564_v29  ;;  %1072 = vst.msk [vmem:[%s1598_s29 + $0x88] sm:$0xff] %vm1054_vm0, %v1039_v25  ;;  %v819_v40 = vld [vmem:[%s1536_s17 + $0xa8] sm:$0xff]  ;;  %v533_v45 = vld [vmem:[%s1501_s25 + $0xb8] sm:$0xff] }
  0x5e   : > { %v913_v37 = vmax.f32 %v849_v26, %v881_v21  ;;  %v723_v39 = vmax.f32 %v659_v27, %v691_v24  ;;  %v692_v41 = vld [vmem:[%s1519_s23 + $0xb0] sm:$0xff]  ;;  %v565_v46 = vld [vmem:[%s1507_s28 + $0xb8] sm:$0xff]  ;;  %v946_v49 = vld [vmem:[%s1557_s0 + $0xa0] sm:$0xff] }
  0x5f   : > { %v1040_v42 = vmax.f32 %v976_v31, %v1008_v16  ;;  %v850_v43 = vmax.f32 %v786_v34, %v818_v23  ;;  %v660_v44 = vmax.f32 %v596_v36, %v628_v30  ;;  %v629_v47 = vld [vmem:[%s1513_s16 + $0xb8] sm:$0xff]  ;;  %v1010_v50 = vld [vmem:[%s1563_s1 + $0xa0] sm:$0xff]  ;;  %v756_v52 = vld [vmem:[%s1528_s27 + $0xb0] sm:$0xff]  ;;  %v597_v53 = vmax.f32 %v533_v45, %v565_v46 }
  0x60   : > { %v977_v48 = vmax.f32 %v913_v37, %v945_v32  ;;  %v787_v51 = vmax.f32 %v723_v39, %v755_v35  ;;  %v883_v55 = vld [vmem:[%s1546_s26 + $0xa8] sm:$0xff]  ;;  %v820_v57 = vld [vmem:[%s1536_s17 + $0xb0] sm:$0xff]  ;;  %v693_v58 = vld [vmem:[%s1519_s23 + $0xb8] sm:$0xff] }
  0x61   : > { %1073 = vst.msk [vmem:[%s1598_s29 + $0x90] sm:$0xff] %vm1054_vm0, %v1040_v42  ;;  %v914_v54 = vmax.f32 %v850_v43, %v882_v38  ;;  %v724_v56 = vmax.f32 %v660_v44, %v692_v41  ;;  %v661_v61 = vmax.f32 %v597_v53, %v629_v47  ;;  %v534_v62 = vld [vmem:[%s1501_s25 + $0xc0] sm:$0xff]  ;;  %v947_v2 = vld [vmem:[%s1557_s0 + $0xa8] sm:$0xff]  ;;  %v757_v5 = vld [vmem:[%s1528_s27 + $0xb8] sm:$0xff] }
  0x62   : > { %v1041_v59 = vmax.f32 %v977_v48, %v1009_v33  ;;  %v851_v60 = vmax.f32 %v787_v51, %v819_v40  ;;  %v566_v63 = vld [vmem:[%s1507_s28 + $0xc0] sm:$0xff]  ;;  %v1011_v3 = vld [vmem:[%s1563_s1 + $0xa8] sm:$0xff]  ;;  %v884_v8 = vld [vmem:[%s1546_s26 + $0xb0] sm:$0xff] }
  0x63   : > { %v630_v0 = vld [vmem:[%s1513_s16 + $0xc0] sm:$0xff]  ;;  %v978_v1 = vmax.f32 %v914_v54, %v946_v49  ;;  %v788_v4 = vmax.f32 %v724_v56, %v756_v52  ;;  %v598_v6 = vmax.f32 %v534_v62, %v566_v63  ;;  %v725_v9 = vmax.f32 %v661_v61, %v693_v58  ;;  %v821_v10 = vld [vmem:[%s1536_s17 + $0xb8] sm:$0xff]  ;;  %v535_v15 = vld [vmem:[%s1501_s25 + $0xc8] sm:$0xff] }
  0x64   : > { %1074 = vst.msk [vmem:[%s1598_s29 + $0x98] sm:$0xff] %vm1054_vm0, %v1041_v59  ;;  %v915_v7 = vmax.f32 %v851_v60, %v883_v55  ;;  %v694_v11 = vld [vmem:[%s1519_s23 + $0xc0] sm:$0xff]  ;;  %v567_v16 = vld [vmem:[%s1507_s28 + $0xc8] sm:$0xff]  ;;  %v948_v19 = vld [vmem:[%s1557_s0 + $0xb0] sm:$0xff] }
  0x65   : > { %v1042_v12 = vmax.f32 %v978_v1, %v1010_v50  ;;  %v852_v13 = vmax.f32 %v788_v4, %v820_v57  ;;  %v662_v14 = vmax.f32 %v598_v6, %v630_v0  ;;  %v631_v17 = vld [vmem:[%s1513_s16 + $0xc8] sm:$0xff]  ;;  %v1012_v20 = vld [vmem:[%s1563_s1 + $0xb0] sm:$0xff]  ;;  %v789_v21 = vmax.f32 %v725_v9, %v757_v5  ;;  %v758_v22 = vld [vmem:[%s1528_s27 + $0xc0] sm:$0xff] }
  0x66   : > { %v979_v18 = vmax.f32 %v915_v7, %v947_v2  ;;  %v599_v23 = vmax.f32 %v535_v15, %v567_v16  ;;  %v885_v25 = vld [vmem:[%s1546_s26 + $0xb8] sm:$0xff]  ;;  %v822_v27 = vld [vmem:[%s1536_s17 + $0xc0] sm:$0xff]  ;;  %v695_v28 = vld [vmem:[%s1519_s23 + $0xc8] sm:$0xff] }
  0x67   : > { %1075 = vst.msk [vmem:[%s1598_s29 + $0xa0] sm:$0xff] %vm1054_vm0, %v1042_v12  ;;  %v916_v24 = vmax.f32 %v852_v13, %v884_v8  ;;  %v726_v26 = vmax.f32 %v662_v14, %v694_v11  ;;  %v853_v30 = vmax.f32 %v789_v21, %v821_v10  ;;  %v536_v32 = vld [vmem:[%s1501_s25 + $0xd0] sm:$0xff]  ;;  %v949_v36 = vld [vmem:[%s1557_s0 + $0xb8] sm:$0xff]  ;;  %v759_v39 = vld [vmem:[%s1528_s27 + $0xc8] sm:$0xff] }
  0x68   : > { %v1043_v29 = vmax.f32 %v979_v18, %v1011_v3  ;;  %v663_v31 = vmax.f32 %v599_v23, %v631_v17  ;;  %v568_v33 = vld [vmem:[%s1507_s28 + $0xd0] sm:$0xff]  ;;  %v1013_v37 = vld [vmem:[%s1563_s1 + $0xb8] sm:$0xff]  ;;  %v886_v42 = vld [vmem:[%s1546_s26 + $0xc0] sm:$0xff] }
  0x69   : > { %v632_v34 = vld [vmem:[%s1513_s16 + $0xd0] sm:$0xff]  ;;  %v980_v35 = vmax.f32 %v916_v24, %v948_v19  ;;  %v790_v38 = vmax.f32 %v726_v26, %v758_v22  ;;  %v600_v40 = vmax.f32 %v536_v32, %v568_v33  ;;  %v917_v41 = vmax.f32 %v853_v30, %v885_v25  ;;  %v823_v44 = vld [vmem:[%s1536_s17 + $0xc8] sm:$0xff]  ;;  %v537_v49 = vld [vmem:[%s1501_s25 + $0xd8] sm:$0xff] }
  0x6a   : > { %1076 = vst.msk [vmem:[%s1598_s29 + $0xa8] sm:$0xff] %vm1054_vm0, %v1043_v29  ;;  %v727_v43 = vmax.f32 %v663_v31, %v695_v28  ;;  %v696_v45 = vld [vmem:[%s1519_s23 + $0xd0] sm:$0xff]  ;;  %v569_v50 = vld [vmem:[%s1507_s28 + $0xd8] sm:$0xff]  ;;  %v950_v53 = vld [vmem:[%s1557_s0 + $0xc0] sm:$0xff] }
  0x6b   : > { %v1044_v46 = vmax.f32 %v980_v35, %v1012_v20  ;;  %v854_v47 = vmax.f32 %v790_v38, %v822_v27  ;;  %v664_v48 = vmax.f32 %v600_v40, %v632_v34  ;;  %v633_v51 = vld [vmem:[%s1513_s16 + $0xd8] sm:$0xff]  ;;  %v981_v52 = vmax.f32 %v917_v41, %v949_v36  ;;  %v1014_v54 = vld [vmem:[%s1563_s1 + $0xc0] sm:$0xff]  ;;  %v760_v56 = vld [vmem:[%s1528_s27 + $0xd0] sm:$0xff] }
  0x6c   : > { %v791_v55 = vmax.f32 %v727_v43, %v759_v39  ;;  %v601_v57 = vmax.f32 %v537_v49, %v569_v50  ;;  %v887_v59 = vld [vmem:[%s1546_s26 + $0xc8] sm:$0xff]  ;;  %v824_v61 = vld [vmem:[%s1536_s17 + $0xd0] sm:$0xff]  ;;  %v697_v62 = vld [vmem:[%s1519_s23 + $0xd8] sm:$0xff] }
  0x6d   : > { %1077 = vst.msk [vmem:[%s1598_s29 + $0xb0] sm:$0xff] %vm1054_vm0, %v1044_v46  ;;  %v918_v58 = vmax.f32 %v854_v47, %v886_v42  ;;  %v728_v60 = vmax.f32 %v664_v48, %v696_v45  ;;  %v1045_v63 = vmax.f32 %v981_v52, %v1013_v37  ;;  %v538_v2 = vld [vmem:[%s1501_s25 + $0xe0] sm:$0xff]  ;;  %v951_v6 = vld [vmem:[%s1557_s0 + $0xc8] sm:$0xff]  ;;  %v761_v9 = vld [vmem:[%s1528_s27 + $0xd8] sm:$0xff] }
  0x6e   : > { %v855_v0 = vmax.f32 %v791_v55, %v823_v44  ;;  %v665_v1 = vmax.f32 %v601_v57, %v633_v51  ;;  %v570_v3 = vld [vmem:[%s1507_s28 + $0xe0] sm:$0xff]  ;;  %v1015_v7 = vld [vmem:[%s1563_s1 + $0xc8] sm:$0xff]  ;;  %v888_v12 = vld [vmem:[%s1546_s26 + $0xd0] sm:$0xff] }
  0x6f   : > { %v634_v4 = vld [vmem:[%s1513_s16 + $0xe0] sm:$0xff]  ;;  %v982_v5 = vmax.f32 %v918_v58, %v950_v53  ;;  %v792_v8 = vmax.f32 %v728_v60, %v760_v56  ;;  %v602_v10 = vmax.f32 %v538_v2, %v570_v3  ;;  %1078 = vst.msk [vmem:[%s1598_s29 + $0xb8] sm:$0xff] %vm1054_vm0, %v1045_v63  ;;  %v825_v14 = vld [vmem:[%s1536_s17 + $0xd8] sm:$0xff]  ;;  %v539_v19 = vld [vmem:[%s1501_s25 + $0xe8] sm:$0xff] }
  0x70   : > { %v919_v11 = vmax.f32 %v855_v0, %v887_v59  ;;  %v729_v13 = vmax.f32 %v665_v1, %v697_v62  ;;  %v698_v15 = vld [vmem:[%s1519_s23 + $0xe0] sm:$0xff]  ;;  %v571_v20 = vld [vmem:[%s1507_s28 + $0xe8] sm:$0xff]  ;;  %v952_v23 = vld [vmem:[%s1557_s0 + $0xd0] sm:$0xff] }
  0x71   : > { %v1046_v16 = vmax.f32 %v982_v5, %v1014_v54  ;;  %v856_v17 = vmax.f32 %v792_v8, %v824_v61  ;;  %v666_v18 = vmax.f32 %v602_v10, %v634_v4  ;;  %v635_v21 = vld [vmem:[%s1513_s16 + $0xe8] sm:$0xff]  ;;  %v1016_v24 = vld [vmem:[%s1563_s1 + $0xd0] sm:$0xff]  ;;  %v762_v26 = vld [vmem:[%s1528_s27 + $0xe0] sm:$0xff]  ;;  %v603_v27 = vmax.f32 %v539_v19, %v571_v20 }
  0x72   : > { %v983_v22 = vmax.f32 %v919_v11, %v951_v6  ;;  %v793_v25 = vmax.f32 %v729_v13, %v761_v9  ;;  %v889_v29 = vld [vmem:[%s1546_s26 + $0xd8] sm:$0xff]  ;;  %v826_v31 = vld [vmem:[%s1536_s17 + $0xe0] sm:$0xff]  ;;  %v699_v32 = vld [vmem:[%s1519_s23 + $0xe8] sm:$0xff] }
  0x73   : > { %1079 = vst.msk [vmem:[%s1598_s29 + $0xc0] sm:$0xff] %vm1054_vm0, %v1046_v16  ;;  %v920_v28 = vmax.f32 %v856_v17, %v888_v12  ;;  %v730_v30 = vmax.f32 %v666_v18, %v698_v15  ;;  %v667_v35 = vmax.f32 %v603_v27, %v635_v21  ;;  %v540_v36 = vld [vmem:[%s1501_s25 + $0xf0] sm:$0xff]  ;;  %v953_v40 = vld [vmem:[%s1557_s0 + $0xd8] sm:$0xff]  ;;  %v763_v43 = vld [vmem:[%s1528_s27 + $0xe8] sm:$0xff] }
  0x74   : > { %v1047_v33 = vmax.f32 %v983_v22, %v1015_v7  ;;  %v857_v34 = vmax.f32 %v793_v25, %v825_v14  ;;  %v572_v37 = vld [vmem:[%s1507_s28 + $0xf0] sm:$0xff]  ;;  %v1017_v41 = vld [vmem:[%s1563_s1 + $0xd8] sm:$0xff]  ;;  %v890_v46 = vld [vmem:[%s1546_s26 + $0xe0] sm:$0xff] }
  0x75   : > { %v636_v38 = vld [vmem:[%s1513_s16 + $0xf0] sm:$0xff]  ;;  %v984_v39 = vmax.f32 %v920_v28, %v952_v23  ;;  %v794_v42 = vmax.f32 %v730_v30, %v762_v26  ;;  %v604_v44 = vmax.f32 %v540_v36, %v572_v37  ;;  %v731_v47 = vmax.f32 %v667_v35, %v699_v32  ;;  %v827_v48 = vld [vmem:[%s1536_s17 + $0xe8] sm:$0xff]  ;;  %v541_v53 = vld [vmem:[%s1501_s25 + $0xf8] sm:$0xff]  ;;  %s1287_s25 = sshll.u32 %s1467_s13, 12  ;;  %s1393_s13 = smov [#allocation2]  }
  0x76   : > { %1080 = vst.msk [vmem:[%s1598_s29 + $0xc8] sm:$0xff] %vm1054_vm0, %v1047_v33  ;;  %v921_v45 = vmax.f32 %v857_v34, %v889_v29  ;;  %v700_v49 = vld [vmem:[%s1519_s23 + $0xf0] sm:$0xff]  ;;  %v573_v54 = vld [vmem:[%s1507_s28 + $0xf8] sm:$0xff]  ;;  %v954_v57 = vld [vmem:[%s1557_s0 + $0xe0] sm:$0xff]  ;;  %s1101_s28 = sshll.u32 %s1598_s29, 4  ;;  %s1916_s28 = int_to_ptr.vmem [resolvable:$true] %s1101_s28 }
  0x77   : > { %v1048_v50 = vmax.f32 %v984_v39, %v1016_v24  ;;  %v858_v51 = vmax.f32 %v794_v42, %v826_v31  ;;  %v668_v52 = vmax.f32 %v604_v44, %v636_v38  ;;  %v637_v55 = vld [vmem:[%s1513_s16 + $0xf8] sm:$0xff]  ;;  %v795_v58 = vmax.f32 %v731_v47, %v763_v43  ;;  %v764_v59 = vld [vmem:[%s1528_s27 + $0xf0] sm:$0xff]  ;;  %v891_v62 = vld [vmem:[%s1546_s26 + $0xe8] sm:$0xff] }
  0x78   : > { %v985_v56 = vmax.f32 %v921_v45, %v953_v40  ;;  %v605_v60 = vmax.f32 %v541_v53, %v573_v54  ;;  %v701_v0 = vld [vmem:[%s1519_s23 + $0xf8] sm:$0xff]  ;;  %v1018_v2 = vld [vmem:[%s1563_s1 + $0xe0] sm:$0xff]  ;;  %v828_v4 = vld [vmem:[%s1536_s17 + $0xf0] sm:$0xff] }
  0x79   : > { %1081 = vst.msk [vmem:[%s1598_s29 + $0xd0] sm:$0xff] %vm1054_vm0, %v1048_v50  ;;  %v922_v61 = vmax.f32 %v858_v51, %v890_v46  ;;  %v732_v63 = vmax.f32 %v668_v52, %v700_v49  ;;  %v859_v3 = vmax.f32 %v795_v58, %v827_v48  ;;  %v955_v7 = vld [vmem:[%s1557_s0 + $0xe8] sm:$0xff]  ;;  %v765_v9 = vld [vmem:[%s1528_s27 + $0xf8] sm:$0xff]  ;;  %v892_v11 = vld [vmem:[%s1546_s26 + $0xf0] sm:$0xff]  ;;  %s1914_s27 = scalar_lea.hbm %s1972_s9, %s1287_s25 }
  0x7a   : > { %v1049_v1 = vmax.f32 %v985_v56, %v1017_v41  ;;  %v669_v5 = vmax.f32 %v605_v60, %v637_v55  ;;  %v1019_v14 = vld [vmem:[%s1563_s1 + $0xe8] sm:$0xff]  ;;  %v829_v16 = vld [vmem:[%s1536_s17 + $0xf8] sm:$0xff]  ;;  %v956_v18 = vld [vmem:[%s1557_s0 + $0xf0] sm:$0xff]  ;;  %s1333_s17 = sshll.u32 %s1393_s13, 4  ;;  %s1334_s17 = int_to_ptr.vmem [resolvable:$false] %s1333_s17 }
  0x7b   : > { %v986_v6 = vmax.f32 %v922_v61, %v954_v57  ;;  %v796_v8 = vmax.f32 %v732_v63, %v764_v59  ;;  %v923_v10 = vmax.f32 %v859_v3, %v891_v62  ;;  %v893_v21 = vld [vmem:[%s1546_s26 + $0xf8] sm:$0xff]  ;;  %v1020_v23 = vld [vmem:[%s1563_s1 + $0xf0] sm:$0xff]  ;;  %s1335_s26 = scalar_lea.vmem %s1334_s17, 8192  ;;  %p1336_p0 = scmp.lt.s32.totalorder %s1916_s28, %s1334_s17 }
  0x7c   : > { %1082 = vst.msk [vmem:[%s1598_s29 + $0xd8] sm:$0xff] %vm1054_vm0, %v1049_v1  ;;  %v733_v12 = vmax.f32 %v669_v5, %v701_v0  ;;  %v957_v26 = vld [vmem:[%s1557_s0 + $0xf8] sm:$0xff]  ;;  %s1922_s0 = scalar_lea.sflag [#allocation3], %s452_s2 }
  0x7d   : > { %v1050_v13 = vmax.f32 %v986_v6, %v1018_v2  ;;  %v860_v15 = vmax.f32 %v796_v8, %v828_v4  ;;  %v987_v17 = vmax.f32 %v923_v10, %v955_v7  ;;  %v1021_v29 = vld [vmem:[%s1563_s1 + $0xf8] sm:$0xff]  ;;  %s1329_s1 = scalar_lea.vmem %s1916_s28, 4096 }
  0x7e   : > { %v797_v19 = vmax.f32 %v733_v12, %v765_v9  ;;  %p1330_p11 = scmp.ne.s32.totalorder %s1916_s28, %s1329_s1  ;;  %p1337_p1 = scmp.lt.s32.totalorder %s1335_s26, %s1329_s1 }
  0x7f   : > { %1083 = vst.msk [vmem:[%s1598_s29 + $0xe0] sm:$0xff] %vm1054_vm0, %v1050_v13  ;;  %v924_v20 = vmax.f32 %v860_v15, %v892_v11  ;;  %v1051_v22 = vmax.f32 %v987_v17, %v1019_v14 }
  0x80   : > { %v861_v24 = vmax.f32 %v797_v19, %v829_v16  ;;  %p1331_p12 = pnand %p1330_p11, %p1484_p5  ;;  %p1338_p2 = por %p1337_p1, %p1336_p0 }
  0x81   : > { %v988_v25 = vmax.f32 %v924_v20, %v956_v18  ;;  %1084 = vst.msk [vmem:[%s1598_s29 + $0xe8] sm:$0xff] %vm1054_vm0, %v1051_v22 }
  0x82   : > { %v925_v27 = vmax.f32 %v861_v24, %v893_v21  ;;  %p1332_p13 = pneg %p1331_p12 }
  0x83   : > { %v1052_v28 = vmax.f32 %v988_v25, %v1020_v23 }
  0x84   : > { %v989_v30 = vmax.f32 %v925_v27, %v957_v26  ;;  %p1339_p3 = pnand %p1338_p2, %p1332_p13 }
  0x85   : > { %1085 = vst.msk [vmem:[%s1598_s29 + $0xf0] sm:$0xff] %vm1054_vm0, %v1052_v28 }
  0x86   : > { %v1053_v31 = vmax.f32 %v989_v30, %v1021_v29 }
  0x88   : > { %1086 = vst.msk [vmem:[%s1598_s29 + $0xf8] sm:$0xff] %vm1054_vm0, %v1053_v31 }
  0x89   : > { %1342 = shalt.err (!%p1339_p3)
}
  0x8a   : > { %s1343_s2 = scalar_lea.hbm %s1914_s27, 4096  ;;  %s1347_s24 = scalar_lea.hbm %s1972_s9, 8192 }
  0x8b   : > { %p1344_p4 = scmp.ne.s32.totalorder %s1914_s27, %s1343_s2  ;;  %p1348_p9 = scmp.lt.u32.totalorder %s1914_s27, %s1972_s9 }
  0x8c   : > { %p1349_p10 = scmp.lt.u32.totalorder %s1347_s24, %s1343_s2  ;;  %p1351_p12 = scmp.lt.u32.totalorder %s1343_s2, %s1914_s27 }
  0x8d   : > { %p1345_p7 = pnand %p1344_p4, %p1484_p5 }
  0x8e   : > { %p1350_p11 = por %p1349_p10, %p1348_p9 }
  0x8f   : > { %p1346_p8 = pneg %p1345_p7 }
  0x90   : > { %p1352_p13 = por %p1351_p12, %p1350_p11 }
  0x92   : > { %p1353_p0 = pnand %p1352_p13, %p1346_p8 }
  0x94   : > { %1356 = shalt.err (!%p1353_p0)
}
  0x95   : > { %s1394_s25 = smov 128   ;;  %s1395_s16 = smov 8  }
  0x96   : > { %1288 = dma.vmem_to_hbm [thread:$0]  (%p1484_p5), %s1916_s28, 4096, %s1914_s27, %s1922_s0, %s1394_s25, %s1394_s25, %s1395_s16  }
  0x97 PF: > { %p1294_p1 = scmp.ge.s32.totalorder %s1391_s12, 2  ;;  %s1116_s23 = sand.u32 1, %s1379_s30  }
  0x98   : > { %s1117_s1 = scalar_lea.sflag [#allocation3], %s1116_s23 }
  0x99   : > { %p1291_p2 = pnand %p1294_p1, %p1488_p6 }
  0x9b   : > { %1374 = dma.done.wait (!%p1291_p2), %s1117_s1, 4096  }
  0x9c   : > { %1376 = vsyncadd (!%p1291_p2), %s1117_s1, 4294963200  ;;  %p19_p3 = scmp.ge.s32.totalorder %s1471_s15, 4   ;;  %s1981_s30 = smov %s1383_s10 }
  0x9d   : > { %s1982_s10 = smov %s1387_s11  ;;  %s1983_s11 = smov %s1482_s18 }
  0x9e   : > { %s1984_s12 = smov %s1471_s15  ;;  %21 = sbr.rel (!%p19_p3) target bundleno = 7 (0x7), region = 115 }
  0xa5   :  { %1122 = vsyncpa [#allocation3], 1 }
  0xa6   :  { %1124 = vsyncpa [#allocation3 + $0x1], 1 }

</bundles_post_ra>
